<compile_context>
chip_gen: v7x
topology: tpu7x:2x2x1
jax: 0.10.0
libtpu: 0.0.40
codegen_flags: <defaults>
</compile_context>

<pallas_src>
import jax
import jax.numpy as jnp
from jax import lax
from jax.experimental import pallas as pl
from jax.experimental.pallas import tpu as pltpu

IN_SIZE = 9
HIDDEN = 64
OUT_LANES = 128          # lane-dense value-head width; real output is column 0
STATIC_UNROLL_MAX = 16   # fully unroll the recurrence when it has <= this many steps
FORI_UNROLL = 8          # partial unroll for longer sequences


def rnn_critic_kernel(proj_ref, whh_ref, wfc1_ref, bfc1_ref,
                      wvalp_ref, bvalp_ref, out_ref):
    # proj_ref: (T, TB, H)  hoisted input projection (x @ W_ih^T + b_ih + b_hh),
    #                       time-major, for one batch tile.
    # out_ref:  (TB, 128)   lane-dense value head output (column 0 is real).
    T, TB, H = proj_ref.shape
    half = TB // 2
    whh = whh_ref[...]                                   # (H, H), already transposed

    # ---- Step 0: h_0 == 0, so h_1 = tanh(proj[0]) -- no matmul on the chain.
    p0 = proj_ref[0]                                     # (TB, H)
    h_a = jnp.tanh(p0[:half])
    h_b = jnp.tanh(p0[half:])

    # ---- Recurrence, two independent batch sub-streams so the scheduler can
    # ---- overlap stream A's EUP tanh with stream B's MXU matmul.
    def step(t, carry):
        ha, hb = carry
        pt = proj_ref[t]                                 # (TB, H)
        ha = jnp.tanh(pt[:half]
                      + jnp.dot(ha, whh, preferred_element_type=jnp.float32))
        hb = jnp.tanh(pt[half:]
                      + jnp.dot(hb, whh, preferred_element_type=jnp.float32))
        return ha, hb

    if T > 1:
        if T - 1 <= STATIC_UNROLL_MAX:
            carry = (h_a, h_b)
            for t in range(1, T):                        # short: static unroll
                carry = step(t, carry)
            h_a, h_b = carry
        else:                                            # long: partially unrolled loop
            h_a, h_b = lax.fori_loop(1, T, step, (h_a, h_b), unroll=FORI_UNROLL)

    # ---- MLP head: tanh(fc1(h_T)) then lane-dense value projection.
    # Run per half so the two streams stay independent through the head as well.
    def head(h, row0):
        z = jnp.tanh(
            jnp.dot(h, wfc1_ref[...], preferred_element_type=jnp.float32)
            + bfc1_ref[...]
        )
        out_ref[row0:row0 + half, :] = (
            jnp.dot(z, wvalp_ref[...], preferred_element_type=jnp.float32)
            + bvalp_ref[...]
        )

    head(h_a, 0)
    head(h_b, half)


def pack_kernel_params(raw_params):
    """PyTorch-layout params -> kernel-friendly layout.

    Weights pre-transposed to (in, out); value head zero-padded to 128 lanes.
    (W_ih and the combined RNN bias are consumed in the wrapper's hoisted
    projection, not inside the kernel.)
    """
    _w_ih, _b_ih, w_hh, _b_hh, w_fc1, b_fc1, w_val, b_val = raw_params
    w_val_pad = jnp.zeros((HIDDEN, OUT_LANES), jnp.float32).at[:, 0].set(w_val[0])
    b_val_pad = jnp.zeros((1, OUT_LANES), jnp.float32).at[0, 0].set(b_val[0])
    return (
        w_hh.T.astype(jnp.float32),        # (64, 64)
        w_fc1.T.astype(jnp.float32),       # (64, 64)
        b_fc1[None, :].astype(jnp.float32),  # (1, 64)
        w_val_pad,                         # (64, 128)
        b_val_pad,                         # (1, 128)
    )


def rnn_critic_forward(x, raw_params, *, batch_tile=128):
    """x: (B, 9, T) or (9, T) float32; returns (B, 1)."""
    if x.ndim == 2:
        x = x[None]
    x = x.astype(jnp.float32)
    w_ih, b_ih, _w_hh, b_hh, *_ = raw_params

    # PyTorch permute(0,2,1) gives (B, T, 9); kernel wants time-major.
    x_tmaj = jnp.transpose(x, (2, 0, 1))                 # (T, B, 9)
    T, B, _ = x_tmaj.shape

    # ---- Hoisted input projection: one lane-dense XLA GEMM over all timesteps,
    # ---- with the combined RNN bias (b_ih + b_hh) added exactly once.
    proj = (jnp.tensordot(x_tmaj, w_ih.T.astype(jnp.float32), axes=([2], [0]))
            + (b_ih + b_hh).astype(jnp.float32))         # (T, B, 64)

    # Batch tile: multiple of 16 so each half-stream is sublane-aligned (>= 8 rows).
    tb = max(16, ((int(batch_tile) + 15) // 16) * 16)
    b_pad = -(-B // tb) * tb
    if b_pad != B:
        # Padded rows are all-zero proj -> finite garbage, dropped in the wrapper.
        proj = jnp.pad(proj, ((0, 0), (0, b_pad - B), (0, 0)))
    nb = b_pad // tb
    # NOTE(v7x): for best megacore utilization at large B, prefer nb even (2 TCs).

    kparams = pack_kernel_params(raw_params)

    flops = (2 * (T - 1) * b_pad * HIDDEN * HIDDEN
             + 2 * b_pad * (HIDDEN * HIDDEN + HIDDEN * OUT_LANES))
    transcendentals = (T + 1) * b_pad * HIDDEN
    bytes_accessed = 4 * (T * b_pad * HIDDEN
                          + sum(int(p.size) for p in kparams)
                          + b_pad * OUT_LANES)

    # VMEM: proj block lane-pads 64 -> 128; double-buffered input + output + slack.
    vmem_needed = 4 * (2 * T * tb * 128 + 2 * tb * OUT_LANES) + (2 << 20)
    vmem_limit = int(min(max(32 * 1024 * 1024, vmem_needed), 64 * 1024 * 1024))

    grid_spec = pltpu.PrefetchScalarGridSpec(
        num_scalar_prefetch=0,
        grid=(nb,),
        in_specs=[
            pl.BlockSpec((T, tb, HIDDEN), lambda b: (0, b, 0)),    # proj (time-major)
            pl.BlockSpec((HIDDEN, HIDDEN), lambda b: (0, 0)),      # W_hh^T
            pl.BlockSpec((HIDDEN, HIDDEN), lambda b: (0, 0)),      # W_fc1^T
            pl.BlockSpec((1, HIDDEN), lambda b: (0, 0)),           # b_fc1
            pl.BlockSpec((HIDDEN, OUT_LANES), lambda b: (0, 0)),   # W_val padded
            pl.BlockSpec((1, OUT_LANES), lambda b: (0, 0)),        # b_val padded
        ],
        out_specs=pl.BlockSpec((tb, OUT_LANES), lambda b: (b, 0)),
    )

    out_padded = pl.pallas_call(
        rnn_critic_kernel,
        out_shape=jax.ShapeDtypeStruct((b_pad, OUT_LANES), jnp.float32),
        grid_spec=grid_spec,
        compiler_params=pltpu.CompilerParams(
            dimension_semantics=("parallel",),
            vmem_limit_bytes=vmem_limit,
        ),
        cost_estimate=pl.CostEstimate(
            flops=flops,
            transcendentals=transcendentals,
            bytes_accessed=bytes_accessed,
        ),
    )(proj, *kparams)

    # Drop the padded batch rows and the zero-padded value-head lanes.
    return out_padded[:B, :1]


def init_params(key):
    """Deterministic synthetic init mirroring the module's parameter shapes
    (PyTorch layout: weights are (out, in))."""
    ks = jax.random.split(key, 8)
    s = 1.0 / jnp.sqrt(HIDDEN)
    ortho = jax.nn.initializers.orthogonal(scale=1.0)

    w_ih = jax.random.uniform(ks[0], (HIDDEN, IN_SIZE), jnp.float32, -s, s)
    w_hh = jax.random.uniform(ks[1], (HIDDEN, HIDDEN), jnp.float32, -s, s)
    b_ih = jax.random.uniform(ks[2], (HIDDEN,), jnp.float32, -s, s)
    b_hh = jax.random.uniform(ks[3], (HIDDEN,), jnp.float32, -s, s)
    w_fc1 = ortho(ks[4], (HIDDEN, HIDDEN), jnp.float32)      # orthogonal_(gain=1)
    b_fc1 = jax.random.uniform(ks[5], (HIDDEN,), jnp.float32, -s, s)
    w_val = ortho(ks[6], (1, HIDDEN), jnp.float32)            # orthogonal_(gain=1)
    b_val = jax.random.uniform(ks[7], (1,), jnp.float32, -s, s)
    return (w_ih, b_ih, w_hh, b_hh, w_fc1, b_fc1, w_val, b_val)


def ref_forward(x, raw_params):
    """Pure-JAX reference matching PyTorch RNNCritic.forward."""
    if x.ndim == 2:
        x = x[None]
    xb = jnp.transpose(x, (0, 2, 1)).astype(jnp.float32)     # (B, T, 9)
    w_ih, b_ih, w_hh, b_hh, w_fc1, b_fc1, w_val, b_val = raw_params
    B, T, _ = xb.shape
    h = jnp.zeros((B, HIDDEN), jnp.float32)
    for t in range(T):
        h = jnp.tanh(xb[:, t, :] @ w_ih.T + b_ih + h @ w_hh.T + b_hh)
    z = jnp.tanh(h @ w_fc1.T + b_fc1)
    return z @ w_val.T + b_val


if __name__ == "__main__":
    key = jax.random.PRNGKey(0)
    kx, kp = jax.random.split(key)

    B, T = 2, 8
    x = jax.random.normal(kx, (B, IN_SIZE, T), jnp.float32)   # PyTorch-style (B, 9, T)
    params = init_params(kp)

    out = rnn_critic_forward(x, params)
    out = jax.block_until_ready(out)

    ref = ref_forward(x, params)
    assert out.shape == (B, 1), out.shape
    assert jnp.allclose(out, ref, atol=1e-4, rtol=1e-4), (out, ref)

    print("KERNEL_OK")
</pallas_src>

<mosaic_0001>
module attributes {stable_mosaic.version = 11 : i64} {
  func.func @rnn_critic_kernel(%arg0: i32, %arg1: memref<8x128x64xf32, #tpu.memory_space<vmem>>, %arg2: memref<64x64xf32, #tpu.memory_space<vmem>>, %arg3: memref<64x64xf32, #tpu.memory_space<vmem>>, %arg4: memref<1x64xf32, #tpu.memory_space<vmem>>, %arg5: memref<64x128xf32, #tpu.memory_space<vmem>>, %arg6: memref<1x128xf32, #tpu.memory_space<vmem>>, %arg7: memref<128x128xf32, #tpu.memory_space<vmem>>) attributes {dimension_semantics = [#tpu.dimension_semantics<parallel>], iteration_bounds = array<i64: 1>, scalar_prefetch = 0 : i64, scratch_operands = 0 : i64, tpu.core_type = #tpu.core_type<tc>, window_params = [{transform_indices = @transform_0, window_bounds = array<i64: 8, 128, 64>}, {pipeline_mode = #tpu.pipeline_mode<synchronous>, transform_indices = @transform_1, window_bounds = array<i64: 64, 64>}, {pipeline_mode = #tpu.pipeline_mode<synchronous>, transform_indices = @transform_2, window_bounds = array<i64: 64, 64>}, {pipeline_mode = #tpu.pipeline_mode<synchronous>, transform_indices = @transform_3, window_bounds = array<i64: 1, 64>}, {pipeline_mode = #tpu.pipeline_mode<synchronous>, transform_indices = @transform_4, window_bounds = array<i64: 64, 128>}, {pipeline_mode = #tpu.pipeline_mode<synchronous>, transform_indices = @transform_5, window_bounds = array<i64: 1, 128>}, {transform_indices = @transform_6, window_bounds = array<i64: 128, 128>}]} {
    %c0 = arith.constant 0 : index
    %c0_0 = arith.constant 0 : index
    %0 = vector.load %arg2[%c0, %c0_0] : memref<64x64xf32, #tpu.memory_space<vmem>>, vector<64x64xf32>
    %c0_1 = arith.constant 0 : index
    %c0_2 = arith.constant 0 : index
    %c0_3 = arith.constant 0 : index
    %1 = vector.load %arg1[%c0_1, %c0_2, %c0_3] : memref<8x128x64xf32, #tpu.memory_space<vmem>>, vector<1x128x64xf32>
    %2 = vector.shape_cast %1 : vector<1x128x64xf32> to vector<128x64xf32>
    %3 = vector.extract_strided_slice %2 {offsets = [0, 0], sizes = [64, 64], strides = [1, 1]} : vector<128x64xf32> to vector<64x64xf32>
    %4 = math.tanh %3 : vector<64x64xf32>
    %5 = vector.extract_strided_slice %2 {offsets = [64, 0], sizes = [64, 64], strides = [1, 1]} : vector<128x64xf32> to vector<64x64xf32>
    %6 = math.tanh %5 : vector<64x64xf32>
    %c1 = arith.constant 1 : index
    %c0_4 = arith.constant 0 : index
    %c0_5 = arith.constant 0 : index
    %7 = vector.load %arg1[%c1, %c0_4, %c0_5] : memref<8x128x64xf32, #tpu.memory_space<vmem>>, vector<1x128x64xf32>
    %8 = vector.shape_cast %7 : vector<1x128x64xf32> to vector<128x64xf32>
    %9 = vector.extract_strided_slice %8 {offsets = [0, 0], sizes = [64, 64], strides = [1, 1]} : vector<128x64xf32> to vector<64x64xf32>
    %cst = arith.constant dense<0.000000e+00> : vector<64x64xf32>
    %10 = tpu.matmul %4, %0, %cst {dimension_numbers = #tpu.dot_dimension_numbers<[1], [0], [0], [1], [0, 0, 1, 1], [], []>} : vector<64x64xf32>, vector<64x64xf32>, vector<64x64xf32> -> vector<64x64xf32>
    %11 = arith.addf %9, %10 : vector<64x64xf32>
    %12 = math.tanh %11 : vector<64x64xf32>
    %13 = vector.extract_strided_slice %8 {offsets = [64, 0], sizes = [64, 64], strides = [1, 1]} : vector<128x64xf32> to vector<64x64xf32>
    %cst_6 = arith.constant dense<0.000000e+00> : vector<64x64xf32>
    %14 = tpu.matmul %6, %0, %cst_6 {dimension_numbers = #tpu.dot_dimension_numbers<[1], [0], [0], [1], [0, 0, 1, 1], [], []>} : vector<64x64xf32>, vector<64x64xf32>, vector<64x64xf32> -> vector<64x64xf32>
    %15 = arith.addf %13, %14 : vector<64x64xf32>
    %16 = math.tanh %15 : vector<64x64xf32>
    %c2 = arith.constant 2 : index
    %c0_7 = arith.constant 0 : index
    %c0_8 = arith.constant 0 : index
    %17 = vector.load %arg1[%c2, %c0_7, %c0_8] : memref<8x128x64xf32, #tpu.memory_space<vmem>>, vector<1x128x64xf32>
    %18 = vector.shape_cast %17 : vector<1x128x64xf32> to vector<128x64xf32>
    %19 = vector.extract_strided_slice %18 {offsets = [0, 0], sizes = [64, 64], strides = [1, 1]} : vector<128x64xf32> to vector<64x64xf32>
    %cst_9 = arith.constant dense<0.000000e+00> : vector<64x64xf32>
    %20 = tpu.matmul %12, %0, %cst_9 {dimension_numbers = #tpu.dot_dimension_numbers<[1], [0], [0], [1], [0, 0, 1, 1], [], []>} : vector<64x64xf32>, vector<64x64xf32>, vector<64x64xf32> -> vector<64x64xf32>
    %21 = arith.addf %19, %20 : vector<64x64xf32>
    %22 = math.tanh %21 : vector<64x64xf32>
    %23 = vector.extract_strided_slice %18 {offsets = [64, 0], sizes = [64, 64], strides = [1, 1]} : vector<128x64xf32> to vector<64x64xf32>
    %cst_10 = arith.constant dense<0.000000e+00> : vector<64x64xf32>
    %24 = tpu.matmul %16, %0, %cst_10 {dimension_numbers = #tpu.dot_dimension_numbers<[1], [0], [0], [1], [0, 0, 1, 1], [], []>} : vector<64x64xf32>, vector<64x64xf32>, vector<64x64xf32> -> vector<64x64xf32>
    %25 = arith.addf %23, %24 : vector<64x64xf32>
    %26 = math.tanh %25 : vector<64x64xf32>
    %c3 = arith.constant 3 : index
    %c0_11 = arith.constant 0 : index
    %c0_12 = arith.constant 0 : index
    %27 = vector.load %arg1[%c3, %c0_11, %c0_12] : memref<8x128x64xf32, #tpu.memory_space<vmem>>, vector<1x128x64xf32>
    %28 = vector.shape_cast %27 : vector<1x128x64xf32> to vector<128x64xf32>
    %29 = vector.extract_strided_slice %28 {offsets = [0, 0], sizes = [64, 64], strides = [1, 1]} : vector<128x64xf32> to vector<64x64xf32>
    %cst_13 = arith.constant dense<0.000000e+00> : vector<64x64xf32>
    %30 = tpu.matmul %22, %0, %cst_13 {dimension_numbers = #tpu.dot_dimension_numbers<[1], [0], [0], [1], [0, 0, 1, 1], [], []>} : vector<64x64xf32>, vector<64x64xf32>, vector<64x64xf32> -> vector<64x64xf32>
    %31 = arith.addf %29, %30 : vector<64x64xf32>
    %32 = math.tanh %31 : vector<64x64xf32>
    %33 = vector.extract_strided_slice %28 {offsets = [64, 0], sizes = [64, 64], strides = [1, 1]} : vector<128x64xf32> to vector<64x64xf32>
    %cst_14 = arith.constant dense<0.000000e+00> : vector<64x64xf32>
    %34 = tpu.matmul %26, %0, %cst_14 {dimension_numbers = #tpu.dot_dimension_numbers<[1], [0], [0], [1], [0, 0, 1, 1], [], []>} : vector<64x64xf32>, vector<64x64xf32>, vector<64x64xf32> -> vector<64x64xf32>
    %35 = arith.addf %33, %34 : vector<64x64xf32>
    %36 = math.tanh %35 : vector<64x64xf32>
    %c4 = arith.constant 4 : index
    %c0_15 = arith.constant 0 : index
    %c0_16 = arith.constant 0 : index
    %37 = vector.load %arg1[%c4, %c0_15, %c0_16] : memref<8x128x64xf32, #tpu.memory_space<vmem>>, vector<1x128x64xf32>
    %38 = vector.shape_cast %37 : vector<1x128x64xf32> to vector<128x64xf32>
    %39 = vector.extract_strided_slice %38 {offsets = [0, 0], sizes = [64, 64], strides = [1, 1]} : vector<128x64xf32> to vector<64x64xf32>
    %cst_17 = arith.constant dense<0.000000e+00> : vector<64x64xf32>
    %40 = tpu.matmul %32, %0, %cst_17 {dimension_numbers = #tpu.dot_dimension_numbers<[1], [0], [0], [1], [0, 0, 1, 1], [], []>} : vector<64x64xf32>, vector<64x64xf32>, vector<64x64xf32> -> vector<64x64xf32>
    %41 = arith.addf %39, %40 : vector<64x64xf32>
    %42 = math.tanh %41 : vector<64x64xf32>
    %43 = vector.extract_strided_slice %38 {offsets = [64, 0], sizes = [64, 64], strides = [1, 1]} : vector<128x64xf32> to vector<64x64xf32>
    %cst_18 = arith.constant dense<0.000000e+00> : vector<64x64xf32>
    %44 = tpu.matmul %36, %0, %cst_18 {dimension_numbers = #tpu.dot_dimension_numbers<[1], [0], [0], [1], [0, 0, 1, 1], [], []>} : vector<64x64xf32>, vector<64x64xf32>, vector<64x64xf32> -> vector<64x64xf32>
    %45 = arith.addf %43, %44 : vector<64x64xf32>
    %46 = math.tanh %45 : vector<64x64xf32>
    %c5 = arith.constant 5 : index
    %c0_19 = arith.constant 0 : index
    %c0_20 = arith.constant 0 : index
    %47 = vector.load %arg1[%c5, %c0_19, %c0_20] : memref<8x128x64xf32, #tpu.memory_space<vmem>>, vector<1x128x64xf32>
    %48 = vector.shape_cast %47 : vector<1x128x64xf32> to vector<128x64xf32>
    %49 = vector.extract_strided_slice %48 {offsets = [0, 0], sizes = [64, 64], strides = [1, 1]} : vector<128x64xf32> to vector<64x64xf32>
    %cst_21 = arith.constant dense<0.000000e+00> : vector<64x64xf32>
    %50 = tpu.matmul %42, %0, %cst_21 {dimension_numbers = #tpu.dot_dimension_numbers<[1], [0], [0], [1], [0, 0, 1, 1], [], []>} : vector<64x64xf32>, vector<64x64xf32>, vector<64x64xf32> -> vector<64x64xf32>
    %51 = arith.addf %49, %50 : vector<64x64xf32>
    %52 = math.tanh %51 : vector<64x64xf32>
    %53 = vector.extract_strided_slice %48 {offsets = [64, 0], sizes = [64, 64], strides = [1, 1]} : vector<128x64xf32> to vector<64x64xf32>
    %cst_22 = arith.constant dense<0.000000e+00> : vector<64x64xf32>
    %54 = tpu.matmul %46, %0, %cst_22 {dimension_numbers = #tpu.dot_dimension_numbers<[1], [0], [0], [1], [0, 0, 1, 1], [], []>} : vector<64x64xf32>, vector<64x64xf32>, vector<64x64xf32> -> vector<64x64xf32>
    %55 = arith.addf %53, %54 : vector<64x64xf32>
    %56 = math.tanh %55 : vector<64x64xf32>
    %c6 = arith.constant 6 : index
    %c0_23 = arith.constant 0 : index
    %c0_24 = arith.constant 0 : index
    %57 = vector.load %arg1[%c6, %c0_23, %c0_24] : memref<8x128x64xf32, #tpu.memory_space<vmem>>, vector<1x128x64xf32>
    %58 = vector.shape_cast %57 : vector<1x128x64xf32> to vector<128x64xf32>
    %59 = vector.extract_strided_slice %58 {offsets = [0, 0], sizes = [64, 64], strides = [1, 1]} : vector<128x64xf32> to vector<64x64xf32>
    %cst_25 = arith.constant dense<0.000000e+00> : vector<64x64xf32>
    %60 = tpu.matmul %52, %0, %cst_25 {dimension_numbers = #tpu.dot_dimension_numbers<[1], [0], [0], [1], [0, 0, 1, 1], [], []>} : vector<64x64xf32>, vector<64x64xf32>, vector<64x64xf32> -> vector<64x64xf32>
    %61 = arith.addf %59, %60 : vector<64x64xf32>
    %62 = math.tanh %61 : vector<64x64xf32>
    %63 = vector.extract_strided_slice %58 {offsets = [64, 0], sizes = [64, 64], strides = [1, 1]} : vector<128x64xf32> to vector<64x64xf32>
    %cst_26 = arith.constant dense<0.000000e+00> : vector<64x64xf32>
    %64 = tpu.matmul %56, %0, %cst_26 {dimension_numbers = #tpu.dot_dimension_numbers<[1], [0], [0], [1], [0, 0, 1, 1], [], []>} : vector<64x64xf32>, vector<64x64xf32>, vector<64x64xf32> -> vector<64x64xf32>
    %65 = arith.addf %63, %64 : vector<64x64xf32>
    %66 = math.tanh %65 : vector<64x64xf32>
    %c7 = arith.constant 7 : index
    %c0_27 = arith.constant 0 : index
    %c0_28 = arith.constant 0 : index
    %67 = vector.load %arg1[%c7, %c0_27, %c0_28] : memref<8x128x64xf32, #tpu.memory_space<vmem>>, vector<1x128x64xf32>
    %68 = vector.shape_cast %67 : vector<1x128x64xf32> to vector<128x64xf32>
    %69 = vector.extract_strided_slice %68 {offsets = [0, 0], sizes = [64, 64], strides = [1, 1]} : vector<128x64xf32> to vector<64x64xf32>
    %cst_29 = arith.constant dense<0.000000e+00> : vector<64x64xf32>
    %70 = tpu.matmul %62, %0, %cst_29 {dimension_numbers = #tpu.dot_dimension_numbers<[1], [0], [0], [1], [0, 0, 1, 1], [], []>} : vector<64x64xf32>, vector<64x64xf32>, vector<64x64xf32> -> vector<64x64xf32>
    %71 = arith.addf %69, %70 : vector<64x64xf32>
    %72 = math.tanh %71 : vector<64x64xf32>
    %73 = vector.extract_strided_slice %68 {offsets = [64, 0], sizes = [64, 64], strides = [1, 1]} : vector<128x64xf32> to vector<64x64xf32>
    %cst_30 = arith.constant dense<0.000000e+00> : vector<64x64xf32>
    %74 = tpu.matmul %66, %0, %cst_30 {dimension_numbers = #tpu.dot_dimension_numbers<[1], [0], [0], [1], [0, 0, 1, 1], [], []>} : vector<64x64xf32>, vector<64x64xf32>, vector<64x64xf32> -> vector<64x64xf32>
    %75 = arith.addf %73, %74 : vector<64x64xf32>
    %76 = math.tanh %75 : vector<64x64xf32>
    %c0_31 = arith.constant 0 : index
    %c0_32 = arith.constant 0 : index
    %77 = vector.load %arg3[%c0_31, %c0_32] : memref<64x64xf32, #tpu.memory_space<vmem>>, vector<64x64xf32>
    %cst_33 = arith.constant dense<0.000000e+00> : vector<64x64xf32>
    %78 = tpu.matmul %72, %77, %cst_33 {dimension_numbers = #tpu.dot_dimension_numbers<[1], [0], [0], [1], [0, 0, 1, 1], [], []>} : vector<64x64xf32>, vector<64x64xf32>, vector<64x64xf32> -> vector<64x64xf32>
    %c0_34 = arith.constant 0 : index
    %c0_35 = arith.constant 0 : index
    %79 = vector.load %arg4[%c0_34, %c0_35] : memref<1x64xf32, #tpu.memory_space<vmem>>, vector<1x64xf32>
    %80 = vector.broadcast %79 : vector<1x64xf32> to vector<64x64xf32>
    %81 = arith.addf %78, %80 : vector<64x64xf32>
    %82 = math.tanh %81 : vector<64x64xf32>
    %c0_36 = arith.constant 0 : index
    %c0_37 = arith.constant 0 : index
    %83 = vector.load %arg5[%c0_36, %c0_37] : memref<64x128xf32, #tpu.memory_space<vmem>>, vector<64x128xf32>
    %cst_38 = arith.constant dense<0.000000e+00> : vector<64x128xf32>
    %84 = tpu.matmul %82, %83, %cst_38 {dimension_numbers = #tpu.dot_dimension_numbers<[1], [0], [0], [1], [0, 0, 1, 1], [], []>} : vector<64x64xf32>, vector<64x128xf32>, vector<64x128xf32> -> vector<64x128xf32>
    %c0_39 = arith.constant 0 : index
    %c0_40 = arith.constant 0 : index
    %85 = vector.load %arg6[%c0_39, %c0_40] : memref<1x128xf32, #tpu.memory_space<vmem>>, vector<1x128xf32>
    %86 = vector.broadcast %85 : vector<1x128xf32> to vector<64x128xf32>
    %87 = arith.addf %84, %86 : vector<64x128xf32>
    %c0_41 = arith.constant 0 : index
    %c0_42 = arith.constant 0 : index
    %88 = vector.load %arg7[%c0_41, %c0_42] : memref<128x128xf32, #tpu.memory_space<vmem>>, vector<64x128xf32>
    tpu.vector_store %arg7[%c0_41, %c0_42], %87 {strides = array<i32>} : memref<128x128xf32, #tpu.memory_space<vmem>>, vector<64x128xf32>,
    %c0_43 = arith.constant 0 : index
    %c0_44 = arith.constant 0 : index
    %89 = vector.load %arg3[%c0_43, %c0_44] : memref<64x64xf32, #tpu.memory_space<vmem>>, vector<64x64xf32>
    %cst_45 = arith.constant dense<0.000000e+00> : vector<64x64xf32>
    %90 = tpu.matmul %76, %89, %cst_45 {dimension_numbers = #tpu.dot_dimension_numbers<[1], [0], [0], [1], [0, 0, 1, 1], [], []>} : vector<64x64xf32>, vector<64x64xf32>, vector<64x64xf32> -> vector<64x64xf32>
    %c0_46 = arith.constant 0 : index
    %c0_47 = arith.constant 0 : index
    %91 = vector.load %arg4[%c0_46, %c0_47] : memref<1x64xf32, #tpu.memory_space<vmem>>, vector<1x64xf32>
    %92 = vector.broadcast %91 : vector<1x64xf32> to vector<64x64xf32>
    %93 = arith.addf %90, %92 : vector<64x64xf32>
    %94 = math.tanh %93 : vector<64x64xf32>
    %c0_48 = arith.constant 0 : index
    %c0_49 = arith.constant 0 : index
    %95 = vector.load %arg5[%c0_48, %c0_49] : memref<64x128xf32, #tpu.memory_space<vmem>>, vector<64x128xf32>
    %cst_50 = arith.constant dense<0.000000e+00> : vector<64x128xf32>
    %96 = tpu.matmul %94, %95, %cst_50 {dimension_numbers = #tpu.dot_dimension_numbers<[1], [0], [0], [1], [0, 0, 1, 1], [], []>} : vector<64x64xf32>, vector<64x128xf32>, vector<64x128xf32> -> vector<64x128xf32>
    %c0_51 = arith.constant 0 : index
    %c0_52 = arith.constant 0 : index
    %97 = vector.load %arg6[%c0_51, %c0_52] : memref<1x128xf32, #tpu.memory_space<vmem>>, vector<1x128xf32>
    %98 = vector.broadcast %97 : vector<1x128xf32> to vector<64x128xf32>
    %99 = arith.addf %96, %98 : vector<64x128xf32>
    %c64 = arith.constant 64 : index
    %c0_53 = arith.constant 0 : index
    %100 = vector.load %arg7[%c64, %c0_53] : memref<128x128xf32, #tpu.memory_space<vmem>>, vector<64x128xf32>
    tpu.vector_store %arg7[%c64, %c0_53], %99 {strides = array<i32>} : memref<128x128xf32, #tpu.memory_space<vmem>>, vector<64x128xf32>,
    return
  }
  func.func @transform_0(%arg0: i32) -> (i32, i32, i32) {
    %c0_i32 = arith.constant 0 : i32
    %c0_i32_0 = arith.constant 0 : i32
    %c0_i32_1 = arith.constant 0 : i32
    return %c0_i32, %arg0, %c0_i32_0 : i32, i32, i32
  }
  func.func @transform_1(%arg0: i32) -> (i32, i32) {
    %c0_i32 = arith.constant 0 : i32
    %c0_i32_0 = arith.constant 0 : i32
    %c0_i32_1 = arith.constant 0 : i32
    return %c0_i32, %c0_i32_0 : i32, i32
  }
  func.func @transform_2(%arg0: i32) -> (i32, i32) {
    %c0_i32 = arith.constant 0 : i32
    %c0_i32_0 = arith.constant 0 : i32
    %c0_i32_1 = arith.constant 0 : i32
    return %c0_i32, %c0_i32_0 : i32, i32
  }
  func.func @transform_3(%arg0: i32) -> (i32, i32) {
    %c0_i32 = arith.constant 0 : i32
    %c0_i32_0 = arith.constant 0 : i32
    %c0_i32_1 = arith.constant 0 : i32
    return %c0_i32, %c0_i32_0 : i32, i32
  }
  func.func @transform_4(%arg0: i32) -> (i32, i32) {
    %c0_i32 = arith.constant 0 : i32
    %c0_i32_0 = arith.constant 0 : i32
    %c0_i32_1 = arith.constant 0 : i32
    return %c0_i32, %c0_i32_0 : i32, i32
  }
  func.func @transform_5(%arg0: i32) -> (i32, i32) {
    %c0_i32 = arith.constant 0 : i32
    %c0_i32_0 = arith.constant 0 : i32
    %c0_i32_1 = arith.constant 0 : i32
    return %c0_i32, %c0_i32_0 : i32, i32
  }
  func.func @transform_6(%arg0: i32) -> (i32, i32) {
    %c0_i32 = arith.constant 0 : i32
    %c0_i32_0 = arith.constant 0 : i32
    return %arg0, %c0_i32 : i32, i32
  }
}

</mosaic_0001>

<bundles_post_ra>
// kernel: tpu_custom_call.1
= control target key start
LH: loop header
LB: loop body
LE: loop exit
PB: predicated region body
PF: predicated region fallthrough
CT: control target
= control target key end

     0   :  { %s5329_s0 = inlined_call_operand.vmem [shape: f32[8,128,64], index: 0, kind: input, shape index: {}]   ;;  %s5330_s1 = inlined_call_operand.vmem [shape: f32[64,64], index: 1, kind: input, shape index: {}]   ;;  %s5331_s2 = inlined_call_operand.vmem [shape: f32[64,64], index: 2, kind: input, shape index: {}]   ;;  %s5332_s3 = inlined_call_operand.vmem [shape: f32[1,64], index: 3, kind: input, shape index: {}]   ;;  %s5333_s4 = inlined_call_operand.vmem [shape: f32[64,128], index: 4, kind: input, shape index: {}]   ;;  %s5334_s5 = inlined_call_operand.vmem [shape: f32[1,128], index: 5, kind: input, shape index: {}]   ;;  %s5335_s6 = inlined_call_operand.hbm [shape: f32[128,128], index: 6, kind: output, shape index: {}]  }
   0x1   :  { %v24_v0 = vld [vmem:[%s5330_s1] sm:$0xff]  ;;  %v25_v1 = vld [vmem:[%s5330_s1 + $0x8] sm:$0xff]  ;;  %v26_v2 = vld [vmem:[%s5330_s1 + $0x10] sm:$0xff] }
   0x2   :  { %v4540_v3 = vpack.c.bf16 %v25_v1, %v24_v0  ;;  %v27_v4 = vld [vmem:[%s5330_s1 + $0x18] sm:$0xff]  ;;  %v28_v6 = vld [vmem:[%s5330_s1 + $0x20] sm:$0xff]  ;;  %v29_v7 = vld [vmem:[%s5330_s1 + $0x28] sm:$0xff] }
   0x3   :  { %v4545_v5 = vpack.c.bf16 %v27_v4, %v26_v2  ;;  %v32_v8 = vld [vmem:[%s5329_s0] sm:$0xff]  ;;  %v33_v9 = vld [vmem:[%s5329_s0 + $0x8] sm:$0xff]  ;;  %v34_v11 = vld [vmem:[%s5329_s0 + $0x10] sm:$0xff]  ;;  %v4574_v13 = vpack.c.bf16 %v29_v7, %v28_v6 }
   0x4   :  { %3891 = vmatprep.subr.bf16.mxu0 %v4540_v3  ;;  %3907 = vmatprep.subr.bf16.mxu1 %v4540_v3  ;;  %4181 = vtanh.f32 %v32_v8  ;;  %v40_v10 = vld [vmem:[%s5329_s0 + $0x40] sm:$0xff]  ;;  %v41_v12 = vld [vmem:[%s5329_s0 + $0x48] sm:$0xff]  ;;  %v35_v14 = vld [vmem:[%s5329_s0 + $0x18] sm:$0xff] }
   0x5   :  { %3893 = vmatpush3.bf16.msra.mxu0 %v4540_v3  ;;  %3909 = vmatpush3.bf16.msra.mxu1 %v4540_v3  ;;  %4183 = vtanh.f32 %v33_v9  ;;  %v30_v15 = vld [vmem:[%s5330_s1 + $0x30] sm:$0xff]  ;;  %v31_v16 = vld [vmem:[%s5330_s1 + $0x38] sm:$0xff]  ;;  %v36_v18 = vld [vmem:[%s5329_s0 + $0x20] sm:$0xff] }
   0x6   :  { %3895 = vmatprep.subr.bf16.mxu0 %v4545_v5  ;;  %3911 = vmatprep.subr.bf16.mxu1 %v4545_v5  ;;  %4185 = vtanh.f32 %v40_v10  ;;  %v42_v17 = vld [vmem:[%s5329_s0 + $0x50] sm:$0xff]  ;;  %v43_v19 = vld [vmem:[%s5329_s0 + $0x58] sm:$0xff] }
   0x7   :  { %4187 = vtanh.f32 %v34_v11 }
   0x8   :  { %4189 = vtanh.f32 %v41_v12 }
   0x9   :  { %3897 = vmatpush3.bf16.msra.mxu0 %v4545_v5  ;;  %3913 = vmatpush3.bf16.msra.mxu1 %v4545_v5  ;;  %4191 = vtanh.f32 %v35_v14 }
   0xa   :  { %11 = vsyncpa [#allocation3], 0  ;;  %3899 = vmatprep.subr.bf16.mxu0 %v4574_v13  ;;  %3915 = vmatprep.subr.bf16.mxu1 %v4574_v13  ;;  %v4598_v20 = vpack.c.bf16 %v31_v16, %v30_v15  ;;  %4193 = vtanh.f32 %v42_v17  ;;  %v37_v21 = vld [vmem:[%s5329_s0 + $0x28] sm:$0xff]  ;;  %v44_v22 = vld [vmem:[%s5329_s0 + $0x60] sm:$0xff]  ;;  %vm81_vm0 = vcmask 523264  }
   0xb   :  { %4195 = vtanh.f32 %v36_v18  ;;  %v38_v23 = vld [vmem:[%s5329_s0 + $0x30] sm:$0xff]  ;;  %v45_v24 = vld [vmem:[%s5329_s0 + $0x68] sm:$0xff]  ;;  %v39_v26 = vld [vmem:[%s5329_s0 + $0x38] sm:$0xff] }
   0xc   :  { %4197 = vtanh.f32 %v43_v19  ;;  %v46_v28 = vld [vmem:[%s5329_s0 + $0x70] sm:$0xff]  ;;  %v47_v30 = vld [vmem:[%s5329_s0 + $0x78] sm:$0xff]  ;;  %v2839_v44 = vld [vmem:[%s5329_s0 + $0x88] sm:$0xff] }
   0xd   :  { %3901 = vmatpush3.bf16.msra.mxu0 %v4574_v13  ;;  %3917 = vmatpush3.bf16.msra.mxu1 %v4574_v13  ;;  %4199 = vtanh.f32 %v37_v21  ;;  %v2847_v45 = vld [vmem:[%s5329_s0 + $0xc8] sm:$0xff]  ;;  %v2838_v46 = vld [vmem:[%s5329_s0 + $0x80] sm:$0xff]  ;;  %v2841_v55 = vld [vmem:[%s5329_s0 + $0x98] sm:$0xff] }
   0xe   :  { %v4182_v25 = vpop.eup %4181  ;;  %3903 = vmatprep.subr.bf16.mxu0 %v4598_v20  ;;  %3919 = vmatprep.subr.bf16.mxu1 %v4598_v20  ;;  %4201 = vtanh.f32 %v44_v22  ;;  %v2846_v47 = vld [vmem:[%s5329_s0 + $0xc0] sm:$0xff]  ;;  %v2849_v57 = vld [vmem:[%s5329_s0 + $0xd8] sm:$0xff]  ;;  %v2840_v58 = vld [vmem:[%s5329_s0 + $0x90] sm:$0xff] }
   0xf   :  { %v4184_v27 = vpop.eup %4183  ;;  %3402 = vmatprep.mubr.msk.f32.mxu0 %vm81_vm0, %v4182_v25  ;;  %4203 = vtanh.f32 %v38_v23  ;;  %v2848_v59 = vld [vmem:[%s5329_s0 + $0xd0] sm:$0xff]  ;;  %v2843_v4 = vld [vmem:[%s5329_s0 + $0xa8] sm:$0xff]  ;;  %v2842_v8 = vld [vmem:[%s5329_s0 + $0xa0] sm:$0xff] }
  0x10   :  { %v4186_v29 = vpop.eup %4185  ;;  %4205 = vtanh.f32 %v45_v24  ;;  %v2851_v7 = vld [vmem:[%s5329_s0 + $0xe8] sm:$0xff]  ;;  %v2850_v9 = vld [vmem:[%s5329_s0 + $0xe0] sm:$0xff]  ;;  %v2845_v18 = vld [vmem:[%s5329_s0 + $0xb8] sm:$0xff] }
  0x11   :  { %v4188_v31 = vpop.eup %4187  ;;  %3905 = vmatpush3.bf16.msra.mxu0 %v4598_v20  ;;  %3921 = vmatpush3.bf16.msra.mxu1 %v4598_v20  ;;  %4207 = vtanh.f32 %v39_v26  ;;  %v2853_v21 = vld [vmem:[%s5329_s0 + $0xf8] sm:$0xff]  ;;  %v2844_v22 = vld [vmem:[%s5329_s0 + $0xb0] sm:$0xff] }
  0x12   :  { %v4190_v32 = vpop.eup %4189  ;;  %3430 = vmatprep.mubr.msk.f32.mxu1 %vm81_vm0, %v4186_v29  ;;  %4209 = vtanh.f32 %v46_v28  ;;  %3923 = vmatprep.subr.bf16.mxu0 %v4540_v3  ;;  %v2852_v23 = vld [vmem:[%s5329_s0 + $0xf0] sm:$0xff] }
  0x13   :  { %v4192_v33 = vpop.eup %4191  ;;  %4211 = vtanh.f32 %v47_v30  ;;  %3939 = vmatprep.subr.bf16.mxu1 %v4540_v3 }
  0x14   :  { %v4194_v34 = vpop.eup %4193  ;;  %3403 = vmatmul.mubr.msk.f32.vlgmr.msra.gmra.mrb[0].mxu0 %vm81_vm0, %v4184_v27  ;;  %3431 = vmatmul.mubr.msk.f32.vlgmr.msra.gmra.mrb[0].mxu1 %vm81_vm0, %v4190_v32 }
  0x15   :  { %v4196_v35 = vpop.eup %4195  ;;  %3405 = vmatprep.mubr.msk.f32.mxu0 %vm81_vm0, %v4188_v31  ;;  %3433 = vmatprep.mubr.msk.f32.mxu1 %vm81_vm0, %v4194_v34 }
  0x16   :  { %v4198_v36 = vpop.eup %4197  ;;  %3925 = vmatpush3.bf16.msra.mxu0 %v4540_v3  ;;  %3941 = vmatpush3.bf16.msra.mxu1 %v4540_v3 }
  0x17   :  { %v4200_v37 = vpop.eup %4199  ;;  %3927 = vmatprep.subr.bf16.mxu0 %v4545_v5  ;;  %3943 = vmatprep.subr.bf16.mxu1 %v4545_v5 }
  0x18   :  { %v4202_v38 = vpop.eup %4201  ;;  %3406 = vmatmul.mubr.msk.f32.gmra.mrb[2].mxu0 %vm81_vm0, %v4192_v33  ;;  %3434 = vmatmul.mubr.msk.f32.gmra.mrb[2].mxu1 %vm81_vm0, %v4198_v36 }
  0x19   :  { %v4204_v39 = vpop.eup %4203  ;;  %3408 = vmatprep.mubr.msk.f32.mxu0 %vm81_vm0, %v4196_v35  ;;  %3436 = vmatprep.mubr.msk.f32.mxu1 %vm81_vm0, %v4202_v38 }
  0x1a   :  { %v4206_v40 = vpop.eup %4205  ;;  %3929 = vmatpush3.bf16.msra.mxu0 %v4545_v5  ;;  %3945 = vmatpush3.bf16.msra.mxu1 %v4545_v5 }
  0x1b   :  { %v4208_v41 = vpop.eup %4207  ;;  %3931 = vmatprep.subr.bf16.mxu0 %v4574_v13  ;;  %3947 = vmatprep.subr.bf16.mxu1 %v4574_v13 }
  0x1c   :  { %v4210_v42 = vpop.eup %4209  ;;  %3409 = vmatmul.mubr.msk.f32.gmra.mrb[4].mxu0 %vm81_vm0, %v4200_v37  ;;  %3437 = vmatmul.mubr.msk.f32.gmra.mrb[4].mxu1 %vm81_vm0, %v4206_v40 }
  0x1d   :  { %v4212_v43 = vpop.eup %4211  ;;  %3411 = vmatprep.mubr.msk.f32.mxu0 %vm81_vm0, %v4204_v39  ;;  %3439 = vmatprep.mubr.msk.f32.mxu1 %vm81_vm0, %v4210_v42 }
  0x1e   :  { %3933 = vmatpush3.bf16.msra.mxu0 %v4574_v13  ;;  %3949 = vmatpush3.bf16.msra.mxu1 %v4574_v13 }
  0x1f   :  { %3935 = vmatprep.subr.bf16.mxu0 %v4598_v20  ;;  %3951 = vmatprep.subr.bf16.mxu1 %v4598_v20 }
  0x20   :  { %3412 = vmatmul.mubr.msk.f32.gmra.mrb[6].mxu0 %vm81_vm0, %v4208_v41  ;;  %3440 = vmatmul.mubr.msk.f32.gmra.mrb[6].mxu1 %vm81_vm0, %v4212_v43 }
  0x22   :  { %3937 = vmatpush3.bf16.msra.mxu0 %v4598_v20  ;;  %3953 = vmatpush3.bf16.msra.mxu1 %v4598_v20 }
  0x23   :  { %3955 = vmatprep.subr.bf16.mxu0 %v4540_v3  ;;  %3971 = vmatprep.subr.bf16.mxu1 %v4540_v3 }
  0xe7   :  { %v3404_v48 = vpop.f32.mrb[0].mxu0  ;;  %v3432_v49 = vpop.f32.mrb[0].mxu1 }
  0xe8   :  { %v212_v50 = vadd.f32 %v3404_v48, %v2839_v44  ;;  %v172_v51 = vpop.f32.mrb[1].mxu0  ;;  %v357_v52 = vadd.f32 %v3432_v49, %v2847_v45  ;;  %v317_v53 = vpop.f32.mrb[1].mxu1  ;;  %v2871_v48 = vld [vmem:[%s5329_s0 + $0x108] sm:$0xff]  ;;  %v2870_v49 = vld [vmem:[%s5329_s0 + $0x100] sm:$0xff] }
  0xe9   :  { %v211_v54 = vadd.f32 %v2838_v46, %v172_v51  ;;  %v356_v56 = vadd.f32 %v2846_v47, %v317_v53  ;;  %v2879_v51 = vld [vmem:[%s5329_s0 + $0x148] sm:$0xff] }
  0xea   :  { %4213 = vtanh.f32 %v212_v50 }
  0xeb   :  { %4215 = vtanh.f32 %v211_v54  ;;  %v3407_v60 = vpop.f32.mrb[2].mxu0  ;;  %v3435_v61 = vpop.f32.mrb[2].mxu1  ;;  %v2878_v54 = vld [vmem:[%s5329_s0 + $0x140] sm:$0xff] }
  0xec   :  { %4217 = vtanh.f32 %v357_v52  ;;  %v214_v62 = vadd.f32 %v3407_v60, %v2841_v55  ;;  %v182_v63 = vpop.f32.mrb[3].mxu0  ;;  %v359_v0 = vadd.f32 %v3435_v61, %v2849_v57  ;;  %v327_v1 = vpop.f32.mrb[3].mxu1  ;;  %v2873_v57 = vld [vmem:[%s5329_s0 + $0x118] sm:$0xff]  ;;  %v2872_v60 = vld [vmem:[%s5329_s0 + $0x110] sm:$0xff] }
  0xed   :  { %4219 = vtanh.f32 %v356_v56  ;;  %v213_v2 = vadd.f32 %v2840_v58, %v182_v63  ;;  %v358_v6 = vadd.f32 %v2848_v59, %v327_v1  ;;  %v2881_v63 = vld [vmem:[%s5329_s0 + $0x158] sm:$0xff] }
  0xee   :  { %4221 = vtanh.f32 %v214_v62 }
  0xef   :  { %4223 = vtanh.f32 %v213_v2  ;;  %v3410_v10 = vpop.f32.mrb[4].mxu0  ;;  %v3438_v11 = vpop.f32.mrb[4].mxu1  ;;  %v2880_v2 = vld [vmem:[%s5329_s0 + $0x150] sm:$0xff] }
  0xf0   :  { %4225 = vtanh.f32 %v359_v0  ;;  %v216_v12 = vadd.f32 %v3410_v10, %v2843_v4  ;;  %v192_v14 = vpop.f32.mrb[5].mxu0  ;;  %v361_v15 = vadd.f32 %v3438_v11, %v2851_v7  ;;  %v337_v16 = vpop.f32.mrb[5].mxu1  ;;  %v2875_v7 = vld [vmem:[%s5329_s0 + $0x128] sm:$0xff]  ;;  %v2874_v10 = vld [vmem:[%s5329_s0 + $0x120] sm:$0xff] }
  0xf1   :  { %4227 = vtanh.f32 %v358_v6  ;;  %v215_v17 = vadd.f32 %v2842_v8, %v192_v14  ;;  %v360_v19 = vadd.f32 %v2850_v9, %v337_v16  ;;  %v2883_v14 = vld [vmem:[%s5329_s0 + $0x168] sm:$0xff] }
  0xf2   :  { %4229 = vtanh.f32 %v216_v12 }
  0xf3   :  { %4231 = vtanh.f32 %v215_v17  ;;  %v3413_v24 = vpop.f32.mrb[6].mxu0  ;;  %v3441_v25 = vpop.f32.mrb[6].mxu1  ;;  %v2882_v17 = vld [vmem:[%s5329_s0 + $0x160] sm:$0xff] }
  0xf4   :  { %v4214_v26 = vpop.eup %4213  ;;  %4233 = vtanh.f32 %v361_v15  ;;  %v218_v27 = vadd.f32 %v3413_v24, %v2845_v18  ;;  %v202_v28 = vpop.f32.mrb[7].mxu0  ;;  %v363_v29 = vadd.f32 %v3441_v25, %v2853_v21  ;;  %v2877_v21 = vld [vmem:[%s5329_s0 + $0x138] sm:$0xff]  ;;  %v2876_v24 = vld [vmem:[%s5329_s0 + $0x130] sm:$0xff] }
  0xf5   :  { %v347_v30 = vpop.f32.mrb[7].mxu1  ;;  %v4216_v31 = vpop.eup %4215  ;;  %4235 = vtanh.f32 %v360_v19  ;;  %v217_v32 = vadd.f32 %v2844_v22, %v202_v28 }
  0xf6   :  { %v362_v33 = vadd.f32 %v2852_v23, %v347_v30  ;;  %v4218_v34 = vpop.eup %4217  ;;  %4237 = vtanh.f32 %v218_v27  ;;  %3458 = vmatprep.mubr.msk.f32.mxu0 %vm81_vm0, %v4216_v31  ;;  %v2885_v27 = vld [vmem:[%s5329_s0 + $0x178] sm:$0xff]  ;;  %v2884_v31 = vld [vmem:[%s5329_s0 + $0x170] sm:$0xff] }
  0xf7   :  { %v4220_v35 = vpop.eup %4219  ;;  %4239 = vtanh.f32 %v217_v32  ;;  %3459 = vmatmul.mubr.msk.f32.vlgmr.msra.gmra.mrb[8].mxu0 %vm81_vm0, %v4214_v26 }
  0xf8   :  { %v4222_v36 = vpop.eup %4221  ;;  %4241 = vtanh.f32 %v363_v29  ;;  %3486 = vmatprep.mubr.msk.f32.mxu1 %vm81_vm0, %v4220_v35  ;;  %3957 = vmatpush3.bf16.msra.mxu0 %v4540_v3 }
  0xf9   :  { %v4224_v37 = vpop.eup %4223  ;;  %4243 = vtanh.f32 %v362_v33  ;;  %3487 = vmatmul.mubr.msk.f32.vlgmr.msra.gmra.mrb[8].mxu1 %vm81_vm0, %v4218_v34  ;;  %3959 = vmatprep.subr.bf16.mxu0 %v4545_v5 }
  0xfa   :  { %v4226_v38 = vpop.eup %4225  ;;  %3461 = vmatprep.mubr.msk.f32.mxu0 %vm81_vm0, %v4224_v37  ;;  %3973 = vmatpush3.bf16.msra.mxu1 %v4540_v3 }
  0xfb   :  { %v4228_v39 = vpop.eup %4227  ;;  %3462 = vmatmul.mubr.msk.f32.gmra.mrb[10].mxu0 %vm81_vm0, %v4222_v36  ;;  %3975 = vmatprep.subr.bf16.mxu1 %v4545_v5 }
  0xfc   :  { %v4230_v40 = vpop.eup %4229  ;;  %3489 = vmatprep.mubr.msk.f32.mxu1 %vm81_vm0, %v4228_v39  ;;  %3961 = vmatpush3.bf16.msra.mxu0 %v4545_v5 }
  0xfd   :  { %v4232_v41 = vpop.eup %4231  ;;  %3490 = vmatmul.mubr.msk.f32.gmra.mrb[10].mxu1 %vm81_vm0, %v4226_v38  ;;  %3963 = vmatprep.subr.bf16.mxu0 %v4574_v13 }
  0xfe   :  { %v4234_v42 = vpop.eup %4233  ;;  %3464 = vmatprep.mubr.msk.f32.mxu0 %vm81_vm0, %v4232_v41  ;;  %3977 = vmatpush3.bf16.msra.mxu1 %v4545_v5 }
  0xff   :  { %v4236_v43 = vpop.eup %4235  ;;  %3465 = vmatmul.mubr.msk.f32.gmra.mrb[12].mxu0 %vm81_vm0, %v4230_v40  ;;  %3979 = vmatprep.subr.bf16.mxu1 %v4574_v13 }
 0x100   :  { %v4238_v44 = vpop.eup %4237  ;;  %3492 = vmatprep.mubr.msk.f32.mxu1 %vm81_vm0, %v4236_v43  ;;  %3965 = vmatpush3.bf16.msra.mxu0 %v4574_v13 }
 0x101   :  { %v4240_v45 = vpop.eup %4239  ;;  %3493 = vmatmul.mubr.msk.f32.gmra.mrb[12].mxu1 %vm81_vm0, %v4234_v42  ;;  %3967 = vmatprep.subr.bf16.mxu0 %v4598_v20 }
 0x102   :  { %v4242_v46 = vpop.eup %4241  ;;  %3467 = vmatprep.mubr.msk.f32.mxu0 %vm81_vm0, %v4240_v45  ;;  %3981 = vmatpush3.bf16.msra.mxu1 %v4574_v13 }
 0x103   :  { %v4244_v47 = vpop.eup %4243  ;;  %3468 = vmatmul.mubr.msk.f32.gmra.mrb[14].mxu0 %vm81_vm0, %v4238_v44  ;;  %3983 = vmatprep.subr.bf16.mxu1 %v4598_v20 }
 0x104   :  { %3495 = vmatprep.mubr.msk.f32.mxu1 %vm81_vm0, %v4244_v47  ;;  %3969 = vmatpush3.bf16.msra.mxu0 %v4598_v20 }
 0x105   :  { %3496 = vmatmul.mubr.msk.f32.gmra.mrb[14].mxu1 %vm81_vm0, %v4242_v46  ;;  %3987 = vmatprep.subr.bf16.mxu0 %v4540_v3 }
 0x106   :  { %3985 = vmatpush3.bf16.msra.mxu1 %v4598_v20 }
 0x107   :  { %4003 = vmatprep.subr.bf16.mxu1 %v4540_v3 }
 0x1ca   :  { %v3460_v50 = vpop.f32.mrb[8].mxu0 }
 0x1cb   :  { %v519_v52 = vadd.f32 %v3460_v50, %v2871_v48  ;;  %v479_v53 = vpop.f32.mrb[9].mxu0 }
 0x1cc   :  { %v518_v55 = vadd.f32 %v2870_v49, %v479_v53  ;;  %v3488_v56 = vpop.f32.mrb[8].mxu1  ;;  %v2902_v53 = vld [vmem:[%s5329_s0 + $0x180] sm:$0xff] }
 0x1cd   :  { %4245 = vtanh.f32 %v519_v52  ;;  %v664_v58 = vadd.f32 %v3488_v56, %v2879_v51  ;;  %v624_v59 = vpop.f32.mrb[9].mxu1  ;;  %v2903_v52 = vld [vmem:[%s5329_s0 + $0x188] sm:$0xff] }
 0x1ce   :  { %4247 = vtanh.f32 %v518_v55  ;;  %v3463_v61 = vpop.f32.mrb[10].mxu0  ;;  %v663_v62 = vadd.f32 %v2878_v54, %v624_v59  ;;  %v2911_v55 = vld [vmem:[%s5329_s0 + $0x1c8] sm:$0xff] }
 0x1cf   :  { %4249 = vtanh.f32 %v664_v58  ;;  %v521_v0 = vadd.f32 %v3463_v61, %v2873_v57  ;;  %v489_v1 = vpop.f32.mrb[11].mxu0  ;;  %v2910_v58 = vld [vmem:[%s5329_s0 + $0x1c0] sm:$0xff]  ;;  %v2905_v61 = vld [vmem:[%s5329_s0 + $0x198] sm:$0xff] }
 0x1d0   :  { %4251 = vtanh.f32 %v663_v62  ;;  %v520_v4 = vadd.f32 %v2872_v60, %v489_v1  ;;  %v3491_v6 = vpop.f32.mrb[10].mxu1 }
 0x1d1   :  { %4253 = vtanh.f32 %v521_v0  ;;  %v666_v8 = vadd.f32 %v3491_v6, %v2881_v63  ;;  %v634_v9 = vpop.f32.mrb[11].mxu1  ;;  %v2904_v0 = vld [vmem:[%s5329_s0 + $0x190] sm:$0xff] }
 0x1d2   :  { %4255 = vtanh.f32 %v520_v4  ;;  %v3466_v11 = vpop.f32.mrb[12].mxu0  ;;  %v665_v12 = vadd.f32 %v2880_v2, %v634_v9  ;;  %v2913_v4 = vld [vmem:[%s5329_s0 + $0x1d8] sm:$0xff] }
 0x1d3   :  { %4257 = vtanh.f32 %v666_v8  ;;  %v523_v15 = vadd.f32 %v3466_v11, %v2875_v7  ;;  %v499_v16 = vpop.f32.mrb[13].mxu0  ;;  %v2912_v8 = vld [vmem:[%s5329_s0 + $0x1d0] sm:$0xff]  ;;  %v2907_v11 = vld [vmem:[%s5329_s0 + $0x1a8] sm:$0xff] }
 0x1d4   :  { %4259 = vtanh.f32 %v665_v12  ;;  %v522_v18 = vadd.f32 %v2874_v10, %v499_v16  ;;  %v3494_v19 = vpop.f32.mrb[12].mxu1 }
 0x1d5   :  { %4261 = vtanh.f32 %v523_v15  ;;  %v668_v22 = vadd.f32 %v3494_v19, %v2883_v14  ;;  %v644_v23 = vpop.f32.mrb[13].mxu1  ;;  %v2906_v15 = vld [vmem:[%s5329_s0 + $0x1a0] sm:$0xff] }
 0x1d6   :  { %4263 = vtanh.f32 %v522_v18  ;;  %v3469_v25 = vpop.f32.mrb[14].mxu0  ;;  %v667_v26 = vadd.f32 %v2882_v17, %v644_v23  ;;  %v2915_v18 = vld [vmem:[%s5329_s0 + $0x1e8] sm:$0xff] }
 0x1d7   :  { %v4246_v28 = vpop.eup %4245  ;;  %4265 = vtanh.f32 %v668_v22  ;;  %v525_v29 = vadd.f32 %v3469_v25, %v2877_v21  ;;  %v509_v30 = vpop.f32.mrb[15].mxu0  ;;  %v2914_v22 = vld [vmem:[%s5329_s0 + $0x1e0] sm:$0xff]  ;;  %v2909_v25 = vld [vmem:[%s5329_s0 + $0x1b8] sm:$0xff] }
 0x1d8   :  { %v4248_v32 = vpop.eup %4247  ;;  %4267 = vtanh.f32 %v667_v26  ;;  %v524_v33 = vadd.f32 %v2876_v24, %v509_v30  ;;  %v3497_v34 = vpop.f32.mrb[14].mxu1 }
 0x1d9   :  { %v4250_v35 = vpop.eup %4249  ;;  %4269 = vtanh.f32 %v525_v29  ;;  %v670_v36 = vadd.f32 %v3497_v34, %v2885_v27  ;;  %3514 = vmatprep.mubr.msk.f32.mxu0 %vm81_vm0, %v4248_v32  ;;  %v654_v37 = vpop.f32.mrb[15].mxu1 }
 0x1da   :  { %v4252_v38 = vpop.eup %4251  ;;  %4271 = vtanh.f32 %v524_v33  ;;  %v669_v39 = vadd.f32 %v2884_v31, %v654_v37  ;;  %3515 = vmatmul.mubr.msk.f32.vlgmr.msra.gmra.mrb[16].mxu0 %vm81_vm0, %v4246_v28  ;;  %v2908_v28 = vld [vmem:[%s5329_s0 + $0x1b0] sm:$0xff]  ;;  %v2917_v31 = vld [vmem:[%s5329_s0 + $0x1f8] sm:$0xff] }
 0x1db   :  { %v4254_v40 = vpop.eup %4253  ;;  %4273 = vtanh.f32 %v670_v36  ;;  %3542 = vmatprep.mubr.msk.f32.mxu1 %vm81_vm0, %v4252_v38  ;;  %3989 = vmatpush3.bf16.msra.mxu0 %v4540_v3 }
 0x1dc   :  { %v4256_v41 = vpop.eup %4255  ;;  %4275 = vtanh.f32 %v669_v39  ;;  %3543 = vmatmul.mubr.msk.f32.vlgmr.msra.gmra.mrb[16].mxu1 %vm81_vm0, %v4250_v35  ;;  %3991 = vmatprep.subr.bf16.mxu0 %v4545_v5  ;;  %v2916_v35 = vld [vmem:[%s5329_s0 + $0x1f0] sm:$0xff] }
 0x1dd   :  { %v4258_v42 = vpop.eup %4257  ;;  %3517 = vmatprep.mubr.msk.f32.mxu0 %vm81_vm0, %v4256_v41  ;;  %4005 = vmatpush3.bf16.msra.mxu1 %v4540_v3 }
 0x1de   :  { %v4260_v43 = vpop.eup %4259  ;;  %3518 = vmatmul.mubr.msk.f32.gmra.mrb[18].mxu0 %vm81_vm0, %v4254_v40  ;;  %4007 = vmatprep.subr.bf16.mxu1 %v4545_v5 }
 0x1df   :  { %v4262_v44 = vpop.eup %4261  ;;  %3545 = vmatprep.mubr.msk.f32.mxu1 %vm81_vm0, %v4260_v43  ;;  %3993 = vmatpush3.bf16.msra.mxu0 %v4545_v5 }
 0x1e0   :  { %v4264_v45 = vpop.eup %4263  ;;  %3546 = vmatmul.mubr.msk.f32.gmra.mrb[18].mxu1 %vm81_vm0, %v4258_v42  ;;  %3995 = vmatprep.subr.bf16.mxu0 %v4574_v13 }
 0x1e1   :  { %v4266_v46 = vpop.eup %4265  ;;  %3520 = vmatprep.mubr.msk.f32.mxu0 %vm81_vm0, %v4264_v45  ;;  %4009 = vmatpush3.bf16.msra.mxu1 %v4545_v5 }
 0x1e2   :  { %v4268_v47 = vpop.eup %4267  ;;  %3521 = vmatmul.mubr.msk.f32.gmra.mrb[20].mxu0 %vm81_vm0, %v4262_v44  ;;  %4011 = vmatprep.subr.bf16.mxu1 %v4574_v13 }
 0x1e3   :  { %v4270_v48 = vpop.eup %4269  ;;  %3548 = vmatprep.mubr.msk.f32.mxu1 %vm81_vm0, %v4268_v47  ;;  %3997 = vmatpush3.bf16.msra.mxu0 %v4574_v13 }
 0x1e4   :  { %v4272_v49 = vpop.eup %4271  ;;  %3549 = vmatmul.mubr.msk.f32.gmra.mrb[20].mxu1 %vm81_vm0, %v4266_v46  ;;  %3999 = vmatprep.subr.bf16.mxu0 %v4598_v20 }
 0x1e5   :  { %v4274_v50 = vpop.eup %4273  ;;  %3523 = vmatprep.mubr.msk.f32.mxu0 %vm81_vm0, %v4272_v49  ;;  %4013 = vmatpush3.bf16.msra.mxu1 %v4574_v13 }
 0x1e6   :  { %v4276_v51 = vpop.eup %4275  ;;  %3524 = vmatmul.mubr.msk.f32.gmra.mrb[22].mxu0 %vm81_vm0, %v4270_v48  ;;  %4015 = vmatprep.subr.bf16.mxu1 %v4598_v20 }
 0x1e7   :  { %3551 = vmatprep.mubr.msk.f32.mxu1 %vm81_vm0, %v4276_v51  ;;  %4001 = vmatpush3.bf16.msra.mxu0 %v4598_v20 }
 0x1e8   :  { %3552 = vmatmul.mubr.msk.f32.gmra.mrb[22].mxu1 %vm81_vm0, %v4274_v50  ;;  %4019 = vmatprep.subr.bf16.mxu0 %v4540_v3 }
 0x1e9   :  { %4017 = vmatpush3.bf16.msra.mxu1 %v4598_v20 }
 0x1ea   :  { %4035 = vmatprep.subr.bf16.mxu1 %v4540_v3 }
 0x2ad   :  { %v3516_v54 = vpop.f32.mrb[16].mxu0 }
 0x2ae   :  { %v826_v56 = vadd.f32 %v3516_v54, %v2903_v52  ;;  %v786_v57 = vpop.f32.mrb[17].mxu0 }
 0x2af   :  { %v825_v59 = vadd.f32 %v2902_v53, %v786_v57  ;;  %v3544_v60 = vpop.f32.mrb[16].mxu1  ;;  %v2934_v57 = vld [vmem:[%s5329_s0 + $0x200] sm:$0xff] }
 0x2b0   :  { %4277 = vtanh.f32 %v826_v56  ;;  %v971_v62 = vadd.f32 %v3544_v60, %v2911_v55  ;;  %v931_v63 = vpop.f32.mrb[17].mxu1  ;;  %v2935_v56 = vld [vmem:[%s5329_s0 + $0x208] sm:$0xff] }
 0x2b1   :  { %4279 = vtanh.f32 %v825_v59  ;;  %v3519_v1 = vpop.f32.mrb[18].mxu0  ;;  %v970_v2 = vadd.f32 %v2910_v58, %v931_v63  ;;  %v2943_v59 = vld [vmem:[%s5329_s0 + $0x248] sm:$0xff] }
 0x2b2   :  { %4281 = vtanh.f32 %v971_v62  ;;  %v828_v6 = vadd.f32 %v3519_v1, %v2905_v61  ;;  %v796_v7 = vpop.f32.mrb[19].mxu0  ;;  %v2942_v62 = vld [vmem:[%s5329_s0 + $0x240] sm:$0xff]  ;;  %v2937_v1 = vld [vmem:[%s5329_s0 + $0x218] sm:$0xff] }
 0x2b3   :  { %4283 = vtanh.f32 %v970_v2  ;;  %v827_v9 = vadd.f32 %v2904_v0, %v796_v7  ;;  %v3547_v10 = vpop.f32.mrb[18].mxu1 }
 0x2b4   :  { %4285 = vtanh.f32 %v828_v6  ;;  %v973_v12 = vadd.f32 %v3547_v10, %v2913_v4  ;;  %v941_v14 = vpop.f32.mrb[19].mxu1  ;;  %v2936_v6 = vld [vmem:[%s5329_s0 + $0x210] sm:$0xff] }
 0x2b5   :  { %4287 = vtanh.f32 %v827_v9  ;;  %v3522_v16 = vpop.f32.mrb[20].mxu0  ;;  %v972_v17 = vadd.f32 %v2912_v8, %v941_v14  ;;  %v2945_v9 = vld [vmem:[%s5329_s0 + $0x258] sm:$0xff] }
 0x2b6   :  { %4289 = vtanh.f32 %v973_v12  ;;  %v830_v19 = vadd.f32 %v3522_v16, %v2907_v11  ;;  %v806_v21 = vpop.f32.mrb[21].mxu0  ;;  %v2944_v12 = vld [vmem:[%s5329_s0 + $0x250] sm:$0xff]  ;;  %v2939_v16 = vld [vmem:[%s5329_s0 + $0x228] sm:$0xff] }
 0x2b7   :  { %4291 = vtanh.f32 %v972_v17  ;;  %v829_v23 = vadd.f32 %v2906_v15, %v806_v21  ;;  %v3550_v24 = vpop.f32.mrb[20].mxu1 }
 0x2b8   :  { %4293 = vtanh.f32 %v830_v19  ;;  %v975_v26 = vadd.f32 %v3550_v24, %v2915_v18  ;;  %v951_v27 = vpop.f32.mrb[21].mxu1  ;;  %v2938_v19 = vld [vmem:[%s5329_s0 + $0x220] sm:$0xff] }
 0x2b9   :  { %4295 = vtanh.f32 %v829_v23  ;;  %v3525_v29 = vpop.f32.mrb[22].mxu0  ;;  %v974_v30 = vadd.f32 %v2914_v22, %v951_v27  ;;  %v2947_v23 = vld [vmem:[%s5329_s0 + $0x268] sm:$0xff] }
 0x2ba   :  { %v4278_v32 = vpop.eup %4277  ;;  %4297 = vtanh.f32 %v975_v26  ;;  %v832_v33 = vadd.f32 %v3525_v29, %v2909_v25  ;;  %v816_v34 = vpop.f32.mrb[23].mxu0  ;;  %v2946_v26 = vld [vmem:[%s5329_s0 + $0x260] sm:$0xff]  ;;  %v2941_v29 = vld [vmem:[%s5329_s0 + $0x238] sm:$0xff] }
 0x2bb   :  { %v4280_v36 = vpop.eup %4279  ;;  %4299 = vtanh.f32 %v974_v30  ;;  %v831_v37 = vadd.f32 %v2908_v28, %v816_v34  ;;  %v3553_v38 = vpop.f32.mrb[22].mxu1 }
 0x2bc   :  { %v4282_v39 = vpop.eup %4281  ;;  %4301 = vtanh.f32 %v832_v33  ;;  %v977_v40 = vadd.f32 %v3553_v38, %v2917_v31  ;;  %3570 = vmatprep.mubr.msk.f32.mxu0 %vm81_vm0, %v4280_v36  ;;  %v961_v41 = vpop.f32.mrb[23].mxu1 }
 0x2bd   :  { %v4284_v42 = vpop.eup %4283  ;;  %4303 = vtanh.f32 %v831_v37  ;;  %v976_v43 = vadd.f32 %v2916_v35, %v961_v41  ;;  %3571 = vmatmul.mubr.msk.f32.vlgmr.msra.gmra.mrb[24].mxu0 %vm81_vm0, %v4278_v32  ;;  %v2940_v32 = vld [vmem:[%s5329_s0 + $0x230] sm:$0xff]  ;;  %v2949_v35 = vld [vmem:[%s5329_s0 + $0x278] sm:$0xff] }
 0x2be   :  { %v4286_v44 = vpop.eup %4285  ;;  %4305 = vtanh.f32 %v977_v40  ;;  %3598 = vmatprep.mubr.msk.f32.mxu1 %vm81_vm0, %v4284_v42  ;;  %4021 = vmatpush3.bf16.msra.mxu0 %v4540_v3 }
 0x2bf   :  { %v4288_v45 = vpop.eup %4287  ;;  %4307 = vtanh.f32 %v976_v43  ;;  %3599 = vmatmul.mubr.msk.f32.vlgmr.msra.gmra.mrb[24].mxu1 %vm81_vm0, %v4282_v39  ;;  %4023 = vmatprep.subr.bf16.mxu0 %v4545_v5  ;;  %v2948_v39 = vld [vmem:[%s5329_s0 + $0x270] sm:$0xff] }
 0x2c0   :  { %v4290_v46 = vpop.eup %4289  ;;  %3573 = vmatprep.mubr.msk.f32.mxu0 %vm81_vm0, %v4288_v45  ;;  %4037 = vmatpush3.bf16.msra.mxu1 %v4540_v3 }
 0x2c1   :  { %v4292_v47 = vpop.eup %4291  ;;  %3574 = vmatmul.mubr.msk.f32.gmra.mrb[26].mxu0 %vm81_vm0, %v4286_v44  ;;  %4039 = vmatprep.subr.bf16.mxu1 %v4545_v5 }
 0x2c2   :  { %v4294_v48 = vpop.eup %4293  ;;  %3601 = vmatprep.mubr.msk.f32.mxu1 %vm81_vm0, %v4292_v47  ;;  %4025 = vmatpush3.bf16.msra.mxu0 %v4545_v5 }
 0x2c3   :  { %v4296_v49 = vpop.eup %4295  ;;  %3602 = vmatmul.mubr.msk.f32.gmra.mrb[26].mxu1 %vm81_vm0, %v4290_v46  ;;  %4027 = vmatprep.subr.bf16.mxu0 %v4574_v13 }
 0x2c4   :  { %v4298_v50 = vpop.eup %4297  ;;  %3576 = vmatprep.mubr.msk.f32.mxu0 %vm81_vm0, %v4296_v49  ;;  %4041 = vmatpush3.bf16.msra.mxu1 %v4545_v5 }
 0x2c5   :  { %v4300_v51 = vpop.eup %4299  ;;  %3577 = vmatmul.mubr.msk.f32.gmra.mrb[28].mxu0 %vm81_vm0, %v4294_v48  ;;  %4043 = vmatprep.subr.bf16.mxu1 %v4574_v13 }
 0x2c6   :  { %v4302_v52 = vpop.eup %4301  ;;  %3604 = vmatprep.mubr.msk.f32.mxu1 %vm81_vm0, %v4300_v51  ;;  %4029 = vmatpush3.bf16.msra.mxu0 %v4574_v13 }
 0x2c7   :  { %v4304_v53 = vpop.eup %4303  ;;  %3605 = vmatmul.mubr.msk.f32.gmra.mrb[28].mxu1 %vm81_vm0, %v4298_v50  ;;  %4031 = vmatprep.subr.bf16.mxu0 %v4598_v20 }
 0x2c8   :  { %v4306_v54 = vpop.eup %4305  ;;  %3579 = vmatprep.mubr.msk.f32.mxu0 %vm81_vm0, %v4304_v53  ;;  %4045 = vmatpush3.bf16.msra.mxu1 %v4574_v13 }
 0x2c9   :  { %v4308_v55 = vpop.eup %4307  ;;  %3580 = vmatmul.mubr.msk.f32.gmra.mrb[30].mxu0 %vm81_vm0, %v4302_v52  ;;  %4047 = vmatprep.subr.bf16.mxu1 %v4598_v20 }
 0x2ca   :  { %3607 = vmatprep.mubr.msk.f32.mxu1 %vm81_vm0, %v4308_v55  ;;  %4033 = vmatpush3.bf16.msra.mxu0 %v4598_v20 }
 0x2cb   :  { %3608 = vmatmul.mubr.msk.f32.gmra.mrb[30].mxu1 %vm81_vm0, %v4306_v54  ;;  %4051 = vmatprep.subr.bf16.mxu0 %v4540_v3 }
 0x2cc   :  { %4049 = vmatpush3.bf16.msra.mxu1 %v4598_v20 }
 0x2cd   :  { %4067 = vmatprep.subr.bf16.mxu1 %v4540_v3 }
 0x390   :  { %v3572_v58 = vpop.f32.mrb[24].mxu0 }
 0x391   :  { %v1133_v60 = vadd.f32 %v3572_v58, %v2935_v56  ;;  %v1093_v61 = vpop.f32.mrb[25].mxu0 }
 0x392   :  { %v1132_v63 = vadd.f32 %v2934_v57, %v1093_v61  ;;  %v3600_v0 = vpop.f32.mrb[24].mxu1  ;;  %v2966_v61 = vld [vmem:[%s5329_s0 + $0x280] sm:$0xff] }
 0x393   :  { %4309 = vtanh.f32 %v1133_v60  ;;  %v1278_v2 = vadd.f32 %v3600_v0, %v2943_v59  ;;  %v1238_v4 = vpop.f32.mrb[25].mxu1  ;;  %v2967_v60 = vld [vmem:[%s5329_s0 + $0x288] sm:$0xff] }
 0x394   :  { %4311 = vtanh.f32 %v1132_v63  ;;  %v3575_v7 = vpop.f32.mrb[26].mxu0  ;;  %v1277_v8 = vadd.f32 %v2942_v62, %v1238_v4  ;;  %v2975_v63 = vld [vmem:[%s5329_s0 + $0x2c8] sm:$0xff] }
 0x395   :  { %4313 = vtanh.f32 %v1278_v2  ;;  %v1135_v10 = vadd.f32 %v3575_v7, %v2937_v1  ;;  %v1103_v11 = vpop.f32.mrb[27].mxu0  ;;  %v2974_v2 = vld [vmem:[%s5329_s0 + $0x2c0] sm:$0xff]  ;;  %v2969_v7 = vld [vmem:[%s5329_s0 + $0x298] sm:$0xff] }
 0x396   :  { %4315 = vtanh.f32 %v1277_v8  ;;  %v1134_v14 = vadd.f32 %v2936_v6, %v1103_v11  ;;  %v3603_v15 = vpop.f32.mrb[26].mxu1 }
 0x397   :  { %4317 = vtanh.f32 %v1135_v10  ;;  %v1280_v17 = vadd.f32 %v3603_v15, %v2945_v9  ;;  %v1248_v18 = vpop.f32.mrb[27].mxu1  ;;  %v2968_v10 = vld [vmem:[%s5329_s0 + $0x290] sm:$0xff] }
 0x398   :  { %4319 = vtanh.f32 %v1134_v14  ;;  %v3578_v21 = vpop.f32.mrb[28].mxu0  ;;  %v1279_v22 = vadd.f32 %v2944_v12, %v1248_v18  ;;  %v2977_v14 = vld [vmem:[%s5329_s0 + $0x2d8] sm:$0xff] }
 0x399   :  { %4321 = vtanh.f32 %v1280_v17  ;;  %v1137_v24 = vadd.f32 %v3578_v21, %v2939_v16  ;;  %v1113_v25 = vpop.f32.mrb[29].mxu0  ;;  %v2976_v17 = vld [vmem:[%s5329_s0 + $0x2d0] sm:$0xff]  ;;  %v2971_v21 = vld [vmem:[%s5329_s0 + $0x2a8] sm:$0xff] }
 0x39a   :  { %4323 = vtanh.f32 %v1279_v22  ;;  %v1136_v27 = vadd.f32 %v2938_v19, %v1113_v25  ;;  %v3606_v28 = vpop.f32.mrb[28].mxu1 }
 0x39b   :  { %4325 = vtanh.f32 %v1137_v24  ;;  %v1282_v30 = vadd.f32 %v3606_v28, %v2947_v23  ;;  %v1258_v31 = vpop.f32.mrb[29].mxu1  ;;  %v2970_v24 = vld [vmem:[%s5329_s0 + $0x2a0] sm:$0xff] }
 0x39c   :  { %4327 = vtanh.f32 %v1136_v27  ;;  %v3581_v33 = vpop.f32.mrb[30].mxu0  ;;  %v1281_v34 = vadd.f32 %v2946_v26, %v1258_v31  ;;  %v2979_v27 = vld [vmem:[%s5329_s0 + $0x2e8] sm:$0xff] }
 0x39d   :  { %v4310_v36 = vpop.eup %4309  ;;  %4329 = vtanh.f32 %v1282_v30  ;;  %v1139_v37 = vadd.f32 %v3581_v33, %v2941_v29  ;;  %v1123_v38 = vpop.f32.mrb[31].mxu0  ;;  %v2978_v30 = vld [vmem:[%s5329_s0 + $0x2e0] sm:$0xff]  ;;  %v2973_v33 = vld [vmem:[%s5329_s0 + $0x2b8] sm:$0xff] }
 0x39e   :  { %v4312_v40 = vpop.eup %4311  ;;  %4331 = vtanh.f32 %v1281_v34  ;;  %v1138_v41 = vadd.f32 %v2940_v32, %v1123_v38  ;;  %v3609_v42 = vpop.f32.mrb[30].mxu1 }
 0x39f   :  { %v4314_v43 = vpop.eup %4313  ;;  %4333 = vtanh.f32 %v1139_v37  ;;  %v1284_v44 = vadd.f32 %v3609_v42, %v2949_v35  ;;  %3626 = vmatprep.mubr.msk.f32.mxu0 %vm81_vm0, %v4312_v40  ;;  %v1268_v45 = vpop.f32.mrb[31].mxu1 }
 0x3a0   :  { %v4316_v46 = vpop.eup %4315  ;;  %4335 = vtanh.f32 %v1138_v41  ;;  %v1283_v47 = vadd.f32 %v2948_v39, %v1268_v45  ;;  %3627 = vmatmul.mubr.msk.f32.vlgmr.msra.gmra.mrb[32].mxu0 %vm81_vm0, %v4310_v36  ;;  %v2972_v36 = vld [vmem:[%s5329_s0 + $0x2b0] sm:$0xff]  ;;  %v2981_v39 = vld [vmem:[%s5329_s0 + $0x2f8] sm:$0xff] }
 0x3a1   :  { %v4318_v48 = vpop.eup %4317  ;;  %4337 = vtanh.f32 %v1284_v44  ;;  %3654 = vmatprep.mubr.msk.f32.mxu1 %vm81_vm0, %v4316_v46  ;;  %4053 = vmatpush3.bf16.msra.mxu0 %v4540_v3 }
 0x3a2   :  { %v4320_v49 = vpop.eup %4319  ;;  %4339 = vtanh.f32 %v1283_v47  ;;  %3655 = vmatmul.mubr.msk.f32.vlgmr.msra.gmra.mrb[32].mxu1 %vm81_vm0, %v4314_v43  ;;  %4055 = vmatprep.subr.bf16.mxu0 %v4545_v5  ;;  %v2980_v43 = vld [vmem:[%s5329_s0 + $0x2f0] sm:$0xff] }
 0x3a3   :  { %v4322_v50 = vpop.eup %4321  ;;  %3629 = vmatprep.mubr.msk.f32.mxu0 %vm81_vm0, %v4320_v49  ;;  %4069 = vmatpush3.bf16.msra.mxu1 %v4540_v3 }
 0x3a4   :  { %v4324_v51 = vpop.eup %4323  ;;  %3630 = vmatmul.mubr.msk.f32.gmra.mrb[34].mxu0 %vm81_vm0, %v4318_v48  ;;  %4071 = vmatprep.subr.bf16.mxu1 %v4545_v5 }
 0x3a5   :  { %v4326_v52 = vpop.eup %4325  ;;  %3657 = vmatprep.mubr.msk.f32.mxu1 %vm81_vm0, %v4324_v51  ;;  %4057 = vmatpush3.bf16.msra.mxu0 %v4545_v5 }
 0x3a6   :  { %v4328_v53 = vpop.eup %4327  ;;  %3658 = vmatmul.mubr.msk.f32.gmra.mrb[34].mxu1 %vm81_vm0, %v4322_v50  ;;  %4059 = vmatprep.subr.bf16.mxu0 %v4574_v13 }
 0x3a7   :  { %v4330_v54 = vpop.eup %4329  ;;  %3632 = vmatprep.mubr.msk.f32.mxu0 %vm81_vm0, %v4328_v53  ;;  %4073 = vmatpush3.bf16.msra.mxu1 %v4545_v5 }
 0x3a8   :  { %v4332_v55 = vpop.eup %4331  ;;  %3633 = vmatmul.mubr.msk.f32.gmra.mrb[36].mxu0 %vm81_vm0, %v4326_v52  ;;  %4075 = vmatprep.subr.bf16.mxu1 %v4574_v13 }
 0x3a9   :  { %v4334_v56 = vpop.eup %4333  ;;  %3660 = vmatprep.mubr.msk.f32.mxu1 %vm81_vm0, %v4332_v55  ;;  %4061 = vmatpush3.bf16.msra.mxu0 %v4574_v13 }
 0x3aa   :  { %v4336_v57 = vpop.eup %4335  ;;  %3661 = vmatmul.mubr.msk.f32.gmra.mrb[36].mxu1 %vm81_vm0, %v4330_v54  ;;  %4063 = vmatprep.subr.bf16.mxu0 %v4598_v20 }
 0x3ab   :  { %v4338_v58 = vpop.eup %4337  ;;  %3635 = vmatprep.mubr.msk.f32.mxu0 %vm81_vm0, %v4336_v57  ;;  %4077 = vmatpush3.bf16.msra.mxu1 %v4574_v13 }
 0x3ac   :  { %v4340_v59 = vpop.eup %4339  ;;  %3636 = vmatmul.mubr.msk.f32.gmra.mrb[38].mxu0 %vm81_vm0, %v4334_v56  ;;  %4079 = vmatprep.subr.bf16.mxu1 %v4598_v20 }
 0x3ad   :  { %3663 = vmatprep.mubr.msk.f32.mxu1 %vm81_vm0, %v4340_v59  ;;  %4065 = vmatpush3.bf16.msra.mxu0 %v4598_v20 }
 0x3ae   :  { %3664 = vmatmul.mubr.msk.f32.gmra.mrb[38].mxu1 %vm81_vm0, %v4338_v58  ;;  %4083 = vmatprep.subr.bf16.mxu0 %v4540_v3 }
 0x3af   :  { %4081 = vmatpush3.bf16.msra.mxu1 %v4598_v20 }
 0x3b0   :  { %4099 = vmatprep.subr.bf16.mxu1 %v4540_v3 }
 0x473   :  { %v3628_v62 = vpop.f32.mrb[32].mxu0 }
 0x474   :  { %v1440_v0 = vadd.f32 %v3628_v62, %v2967_v60  ;;  %v1400_v1 = vpop.f32.mrb[33].mxu0  ;;  %v2214_v62 = vld [vmem:[%s5331_s2] sm:$0xff] }
 0x475   :  { %v1439_v4 = vadd.f32 %v2966_v61, %v1400_v1  ;;  %v3656_v6 = vpop.f32.mrb[32].mxu1 }
 0x476   :  { %4341 = vtanh.f32 %v1440_v0  ;;  %v1585_v8 = vadd.f32 %v3656_v6, %v2975_v63  ;;  %v1545_v9 = vpop.f32.mrb[33].mxu1  ;;  %v2999_v0 = vld [vmem:[%s5329_s0 + $0x308] sm:$0xff] }
 0x477   :  { %4343 = vtanh.f32 %v1439_v4  ;;  %v3631_v11 = vpop.f32.mrb[34].mxu0  ;;  %v1584_v12 = vadd.f32 %v2974_v2, %v1545_v9  ;;  %v3007_v2 = vld [vmem:[%s5329_s0 + $0x348] sm:$0xff] }
 0x478   :  { %4345 = vtanh.f32 %v1585_v8  ;;  %v1442_v15 = vadd.f32 %v3631_v11, %v2969_v7  ;;  %v1410_v16 = vpop.f32.mrb[35].mxu0  ;;  %v3006_v7 = vld [vmem:[%s5329_s0 + $0x340] sm:$0xff] }
 0x479   :  { %4347 = vtanh.f32 %v1584_v12  ;;  %v1441_v18 = vadd.f32 %v2968_v10, %v1410_v16  ;;  %v3659_v19 = vpop.f32.mrb[34].mxu1  ;;  %v3001_v10 = vld [vmem:[%s5329_s0 + $0x318] sm:$0xff] }
 0x47a   :  { %4349 = vtanh.f32 %v1442_v15  ;;  %v1587_v22 = vadd.f32 %v3659_v19, %v2977_v14  ;;  %v1555_v23 = vpop.f32.mrb[35].mxu1  ;;  %v3000_v14 = vld [vmem:[%s5329_s0 + $0x310] sm:$0xff] }
 0x47b   :  { %4351 = vtanh.f32 %v1441_v18  ;;  %v3634_v25 = vpop.f32.mrb[36].mxu0  ;;  %v1586_v26 = vadd.f32 %v2976_v17, %v1555_v23  ;;  %v3009_v17 = vld [vmem:[%s5329_s0 + $0x358] sm:$0xff] }
 0x47c   :  { %4353 = vtanh.f32 %v1587_v22  ;;  %v1444_v28 = vadd.f32 %v3634_v25, %v2971_v21  ;;  %v1420_v29 = vpop.f32.mrb[37].mxu0  ;;  %v3008_v21 = vld [vmem:[%s5329_s0 + $0x350] sm:$0xff] }
 0x47d   :  { %4355 = vtanh.f32 %v1586_v26  ;;  %v1443_v31 = vadd.f32 %v2970_v24, %v1420_v29  ;;  %v3662_v32 = vpop.f32.mrb[36].mxu1  ;;  %v3003_v24 = vld [vmem:[%s5329_s0 + $0x328] sm:$0xff] }
 0x47e   :  { %4357 = vtanh.f32 %v1444_v28  ;;  %v1589_v34 = vadd.f32 %v3662_v32, %v2979_v27  ;;  %v1565_v35 = vpop.f32.mrb[37].mxu1  ;;  %v3002_v27 = vld [vmem:[%s5329_s0 + $0x320] sm:$0xff] }
 0x47f   :  { %4359 = vtanh.f32 %v1443_v31  ;;  %v3637_v37 = vpop.f32.mrb[38].mxu0  ;;  %v1588_v38 = vadd.f32 %v2978_v30, %v1565_v35  ;;  %v3011_v30 = vld [vmem:[%s5329_s0 + $0x368] sm:$0xff] }
 0x480   :  { %v4342_v40 = vpop.eup %4341  ;;  %4361 = vtanh.f32 %v1589_v34  ;;  %v1446_v41 = vadd.f32 %v3637_v37, %v2973_v33  ;;  %v1430_v42 = vpop.f32.mrb[39].mxu0  ;;  %v3010_v33 = vld [vmem:[%s5329_s0 + $0x360] sm:$0xff] }
 0x481   :  { %v4344_v44 = vpop.eup %4343  ;;  %4363 = vtanh.f32 %v1588_v38  ;;  %v1445_v45 = vadd.f32 %v2972_v36, %v1430_v42  ;;  %v3665_v46 = vpop.f32.mrb[38].mxu1  ;;  %v3005_v36 = vld [vmem:[%s5329_s0 + $0x338] sm:$0xff] }
 0x482   :  { %v4346_v47 = vpop.eup %4345  ;;  %4365 = vtanh.f32 %v1446_v41  ;;  %v1591_v48 = vadd.f32 %v3665_v46, %v2981_v39  ;;  %3682 = vmatprep.mubr.msk.f32.mxu0 %vm81_vm0, %v4344_v44  ;;  %v1575_v49 = vpop.f32.mrb[39].mxu1  ;;  %v3004_v39 = vld [vmem:[%s5329_s0 + $0x330] sm:$0xff]  ;;  %v3013_v42 = vld [vmem:[%s5329_s0 + $0x378] sm:$0xff] }
 0x483   :  { %v4348_v50 = vpop.eup %4347  ;;  %4367 = vtanh.f32 %v1445_v45  ;;  %v1590_v51 = vadd.f32 %v2980_v43, %v1575_v49  ;;  %3683 = vmatmul.mubr.msk.f32.vlgmr.msra.gmra.mrb[40].mxu0 %vm81_vm0, %v4342_v40  ;;  %v3012_v46 = vld [vmem:[%s5329_s0 + $0x370] sm:$0xff] }
 0x484   :  { %v4350_v52 = vpop.eup %4349  ;;  %4369 = vtanh.f32 %v1591_v48  ;;  %3710 = vmatprep.mubr.msk.f32.mxu1 %vm81_vm0, %v4348_v50  ;;  %4085 = vmatpush3.bf16.msra.mxu0 %v4540_v3 }
 0x485   :  { %v4352_v53 = vpop.eup %4351  ;;  %4371 = vtanh.f32 %v1590_v51  ;;  %3711 = vmatmul.mubr.msk.f32.vlgmr.msra.gmra.mrb[40].mxu1 %vm81_vm0, %v4346_v47  ;;  %4087 = vmatprep.subr.bf16.mxu0 %v4545_v5 }
 0x486   :  { %v4354_v54 = vpop.eup %4353  ;;  %3685 = vmatprep.mubr.msk.f32.mxu0 %vm81_vm0, %v4352_v53  ;;  %4101 = vmatpush3.bf16.msra.mxu1 %v4540_v3 }
 0x487   :  { %v4356_v55 = vpop.eup %4355  ;;  %3686 = vmatmul.mubr.msk.f32.gmra.mrb[42].mxu0 %vm81_vm0, %v4350_v52  ;;  %4103 = vmatprep.subr.bf16.mxu1 %v4545_v5 }
 0x488   :  { %v4358_v56 = vpop.eup %4357  ;;  %3713 = vmatprep.mubr.msk.f32.mxu1 %vm81_vm0, %v4356_v55  ;;  %4089 = vmatpush3.bf16.msra.mxu0 %v4545_v5 }
 0x489   :  { %v4360_v57 = vpop.eup %4359  ;;  %3714 = vmatmul.mubr.msk.f32.gmra.mrb[42].mxu1 %vm81_vm0, %v4354_v54  ;;  %4091 = vmatprep.subr.bf16.mxu0 %v4574_v13 }
 0x48a   :  { %v4362_v58 = vpop.eup %4361  ;;  %3688 = vmatprep.mubr.msk.f32.mxu0 %vm81_vm0, %v4360_v57  ;;  %4105 = vmatpush3.bf16.msra.mxu1 %v4545_v5 }
 0x48b   :  { %v4364_v3 = vpop.eup %4363  ;;  %3689 = vmatmul.mubr.msk.f32.gmra.mrb[44].mxu0 %vm81_vm0, %v4358_v56  ;;  %4107 = vmatprep.subr.bf16.mxu1 %v4574_v13 }
 0x48c   :  { %v4366_v59 = vpop.eup %4365  ;;  %3716 = vmatprep.mubr.msk.f32.mxu1 %vm81_vm0, %v4364_v3  ;;  %4093 = vmatpush3.bf16.msra.mxu0 %v4574_v13 }
 0x48d   :  { %v4368_v60 = vpop.eup %4367  ;;  %3717 = vmatmul.mubr.msk.f32.gmra.mrb[44].mxu1 %vm81_vm0, %v4362_v58  ;;  %4095 = vmatprep.subr.bf16.mxu0 %v4598_v20 }
 0x48e   :  { %v4370_v61 = vpop.eup %4369  ;;  %3691 = vmatprep.mubr.msk.f32.mxu0 %vm81_vm0, %v4368_v60  ;;  %4109 = vmatpush3.bf16.msra.mxu1 %v4574_v13  ;;  %v2215_v13 = vld [vmem:[%s5331_s2 + $0x8] sm:$0xff] }
 0x48f   :  { %v4372_v5 = vpop.eup %4371  ;;  %3692 = vmatmul.mubr.msk.f32.gmra.mrb[46].mxu0 %vm81_vm0, %v4366_v59  ;;  %4111 = vmatprep.subr.bf16.mxu1 %v4598_v20  ;;  %v5065_v63 = vpack.c.bf16 %v2215_v13, %v2214_v62 }
 0x490   :  { %3719 = vmatprep.mubr.msk.f32.mxu1 %vm81_vm0, %v4372_v5  ;;  %4097 = vmatpush3.bf16.msra.mxu0 %v4598_v20 }
 0x491   :  { %3720 = vmatmul.mubr.msk.f32.gmra.mrb[46].mxu1 %vm81_vm0, %v4370_v61  ;;  %4115 = vmatprep.subr.bf16.mxu0 %v5065_v63 }
 0x492   :  { %4113 = vmatpush3.bf16.msra.mxu1 %v4598_v20  ;;  %v2998_v20 = vld [vmem:[%s5329_s0 + $0x300] sm:$0xff] }
 0x556   :  { %v3684_v1 = vpop.f32.mrb[40].mxu0 }
 0x557   :  { %v1747_v4 = vadd.f32 %v3684_v1, %v2999_v0  ;;  %v1707_v6 = vpop.f32.mrb[41].mxu0  ;;  %v2217_v1 = vld [vmem:[%s5331_s2 + $0x18] sm:$0xff] }
 0x558   :  { %v1746_v8 = vadd.f32 %v2998_v20, %v1707_v6  ;;  %v3712_v9 = vpop.f32.mrb[40].mxu1  ;;  %v2216_v20 = vld [vmem:[%s5331_s2 + $0x10] sm:$0xff]  ;;  %v2219_v6 = vld [vmem:[%s5331_s2 + $0x28] sm:$0xff] }
 0x559   :  { %4373 = vtanh.f32 %v1747_v4  ;;  %v1892_v11 = vadd.f32 %v3712_v9, %v3007_v2  ;;  %v1852_v12 = vpop.f32.mrb[41].mxu1  ;;  %v5139_v2 = vpack.c.bf16 %v2217_v1, %v2216_v20  ;;  %v2218_v4 = vld [vmem:[%s5331_s2 + $0x20] sm:$0xff]  ;;  %v2221_v9 = vld [vmem:[%s5331_s2 + $0x38] sm:$0xff] }
 0x55a   :  { %4375 = vtanh.f32 %v1746_v8  ;;  %v3687_v15 = vpop.f32.mrb[42].mxu0  ;;  %v1891_v16 = vadd.f32 %v3006_v7, %v1852_v12  ;;  %v5149_v7 = vpack.c.bf16 %v2219_v6, %v2218_v4  ;;  %v2220_v8 = vld [vmem:[%s5331_s2 + $0x30] sm:$0xff]  ;;  %v2367_v12 = vld [vmem:[%s5333_s4 + $0x8] sm:$0xff]  ;;  %v3045_v20 = vld [vmem:[%s5329_s0 + $0x3f8] sm:$0xff] }
 0x55b   :  { %4377 = vtanh.f32 %v1892_v11  ;;  %v1749_v18 = vadd.f32 %v3687_v15, %v3001_v10  ;;  %v1717_v19 = vpop.f32.mrb[43].mxu0  ;;  %v5159_v10 = vpack.c.bf16 %v2221_v9, %v2220_v8  ;;  %v2366_v11 = vld [vmem:[%s5333_s4] sm:$0xff]  ;;  %v3031_v15 = vld [vmem:[%s5329_s0 + $0x388] sm:$0xff] }
 0x55c   :  { %4379 = vtanh.f32 %v1891_v16  ;;  %v1748_v22 = vadd.f32 %v3000_v14, %v1717_v19  ;;  %v3715_v23 = vpop.f32.mrb[42].mxu1  ;;  %v5170_v14 = vpack.c.bf16 %v2367_v12, %v2366_v11  ;;  %v3030_v16 = vld [vmem:[%s5329_s0 + $0x380] sm:$0xff] }
 0x55d   :  { %4381 = vtanh.f32 %v1749_v18  ;;  %v1894_v25 = vadd.f32 %v3715_v23, %v3009_v17  ;;  %v1862_v26 = vpop.f32.mrb[43].mxu1  ;;  %v3033_v23 = vld [vmem:[%s5329_s0 + $0x398] sm:$0xff] }
 0x55e   :  { %4383 = vtanh.f32 %v1748_v22  ;;  %v3690_v28 = vpop.f32.mrb[44].mxu0  ;;  %v1893_v29 = vadd.f32 %v3008_v21, %v1862_v26  ;;  %4131 = vmatprep.subr.bf16.mxu1 %v5170_v14 }
 0x55f   :  { %4385 = vtanh.f32 %v1894_v25  ;;  %v1751_v31 = vadd.f32 %v3690_v28, %v3003_v24  ;;  %v1727_v32 = vpop.f32.mrb[45].mxu0  ;;  %v3032_v25 = vld [vmem:[%s5329_s0 + $0x390] sm:$0xff] }
 0x560   :  { %4387 = vtanh.f32 %v1893_v29  ;;  %v1750_v34 = vadd.f32 %v3002_v27, %v1727_v32  ;;  %v3718_v35 = vpop.f32.mrb[44].mxu1 }
 0x561   :  { %4389 = vtanh.f32 %v1751_v31  ;;  %v1896_v37 = vadd.f32 %v3718_v35, %v3011_v30  ;;  %v1872_v38 = vpop.f32.mrb[45].mxu1  ;;  %v3035_v31 = vld [vmem:[%s5329_s0 + $0x3a8] sm:$0xff] }
 0x562   :  { %4391 = vtanh.f32 %v1750_v34  ;;  %v3693_v40 = vpop.f32.mrb[46].mxu0  ;;  %v1895_v41 = vadd.f32 %v3010_v33, %v1872_v38  ;;  %v3034_v33 = vld [vmem:[%s5329_s0 + $0x3a0] sm:$0xff] }
 0x563   :  { %v4374_v43 = vpop.eup %4373  ;;  %4393 = vtanh.f32 %v1896_v37  ;;  %v1753_v44 = vadd.f32 %v3693_v40, %v3005_v36  ;;  %v1737_v45 = vpop.f32.mrb[47].mxu0  ;;  %v3038_v40 = vld [vmem:[%s5329_s0 + $0x3c0] sm:$0xff] }
 0x564   :  { %v4376_v47 = vpop.eup %4375  ;;  %4395 = vtanh.f32 %v1895_v41  ;;  %v1752_v48 = vadd.f32 %v3004_v39, %v1737_v45  ;;  %v3721_v49 = vpop.f32.mrb[46].mxu1  ;;  %v3037_v39 = vld [vmem:[%s5329_s0 + $0x3b8] sm:$0xff] }
 0x565   :  { %v4378_v50 = vpop.eup %4377  ;;  %4397 = vtanh.f32 %v1753_v44  ;;  %v1898_v51 = vadd.f32 %v3721_v49, %v3013_v42  ;;  %3738 = vmatprep.mubr.msk.f32.mxu0 %vm81_vm0, %v4376_v47  ;;  %v1882_v52 = vpop.f32.mrb[47].mxu1  ;;  %v3036_v42 = vld [vmem:[%s5329_s0 + $0x3b0] sm:$0xff]  ;;  %v3039_v47 = vld [vmem:[%s5329_s0 + $0x3c8] sm:$0xff] }
 0x566   :  { %v4380_v53 = vpop.eup %4379  ;;  %4399 = vtanh.f32 %v1752_v48  ;;  %v1897_v54 = vadd.f32 %v3012_v46, %v1882_v52  ;;  %3739 = vmatmul.mubr.msk.f32.vlgmr.msra.gmra.mrb[48].mxu0 %vm81_vm0, %v4374_v43  ;;  %v3040_v52 = vld [vmem:[%s5329_s0 + $0x3d0] sm:$0xff] }
 0x567   :  { %v4382_v55 = vpop.eup %4381  ;;  %4401 = vtanh.f32 %v1898_v51  ;;  %3766 = vmatprep.mubr.msk.f32.mxu1 %vm81_vm0, %v4380_v53  ;;  %4117 = vmatpush3.bf16.msra.mxu0 %v5065_v63 }
 0x568   :  { %v4384_v56 = vpop.eup %4383  ;;  %4403 = vtanh.f32 %v1897_v54  ;;  %3767 = vmatmul.mubr.msk.f32.vlgmr.msra.gmra.mrb[48].mxu1 %vm81_vm0, %v4378_v50  ;;  %4119 = vmatprep.subr.bf16.mxu0 %v5139_v2 }
 0x569   :  { %v4386_v57 = vpop.eup %4385  ;;  %3741 = vmatprep.mubr.msk.f32.mxu0 %vm81_vm0, %v4384_v56  ;;  %4133 = vmatpush3.bf16.msra.mxu1 %v5170_v14  ;;  %v3041_v56 = vld [vmem:[%s5329_s0 + $0x3d8] sm:$0xff] }
 0x56a   :  { %v4388_v58 = vpop.eup %4387  ;;  %3742 = vmatmul.mubr.msk.f32.gmra.mrb[50].mxu0 %vm81_vm0, %v4382_v55 }
 0x56b   :  { %v4390_v3 = vpop.eup %4389  ;;  %3769 = vmatprep.mubr.msk.f32.mxu1 %vm81_vm0, %v4388_v58  ;;  %4121 = vmatpush3.bf16.msra.mxu0 %v5139_v2 }
 0x56c   :  { %v4392_v59 = vpop.eup %4391  ;;  %3770 = vmatmul.mubr.msk.f32.gmra.mrb[50].mxu1 %vm81_vm0, %v4386_v57  ;;  %4123 = vmatprep.subr.bf16.mxu0 %v5149_v7 }
 0x56d   :  { %v4394_v60 = vpop.eup %4393  ;;  %3744 = vmatprep.mubr.msk.f32.mxu0 %vm81_vm0, %v4392_v59 }
 0x56e   :  { %v4396_v61 = vpop.eup %4395  ;;  %3745 = vmatmul.mubr.msk.f32.gmra.mrb[52].mxu0 %vm81_vm0, %v4390_v3  ;;  %v3042_v3 = vld [vmem:[%s5329_s0 + $0x3e0] sm:$0xff] }
 0x56f   :  { %v4398_v5 = vpop.eup %4397  ;;  %3772 = vmatprep.mubr.msk.f32.mxu1 %vm81_vm0, %v4396_v61  ;;  %4125 = vmatpush3.bf16.msra.mxu0 %v5149_v7 }
 0x570   :  { %v4400_v62 = vpop.eup %4399  ;;  %3773 = vmatmul.mubr.msk.f32.gmra.mrb[52].mxu1 %vm81_vm0, %v4394_v60  ;;  %4127 = vmatprep.subr.bf16.mxu0 %v5159_v10  ;;  %v3043_v60 = vld [vmem:[%s5329_s0 + $0x3e8] sm:$0xff] }
 0x571   :  { %v4402_v13 = vpop.eup %4401  ;;  %3747 = vmatprep.mubr.msk.f32.mxu0 %vm81_vm0, %v4400_v62  ;;  %v3044_v62 = vld [vmem:[%s5329_s0 + $0x3f0] sm:$0xff] }
 0x572   :  { %v4404_v0 = vpop.eup %4403  ;;  %3748 = vmatmul.mubr.msk.f32.gmra.mrb[54].mxu0 %vm81_vm0, %v4398_v5 }
 0x573   :  { %3775 = vmatprep.mubr.msk.f32.mxu1 %vm81_vm0, %v4404_v0  ;;  %4129 = vmatpush3.bf16.msra.mxu0 %v5159_v10 }
 0x574   :  { %3776 = vmatmul.mubr.msk.f32.gmra.mrb[54].mxu1 %vm81_vm0, %v4402_v13  ;;  %4147 = vmatprep.subr.bf16.mxu0 %v5065_v63 }
 0x639   :  { %v3740_v17 = vpop.f32.mrb[48].mxu0 }
 0x63a   :  { %v2054_v18 = vadd.f32 %v3740_v17, %v3031_v15  ;;  %v2014_v19 = vpop.f32.mrb[49].mxu0  ;;  %v2369_v17 = vld [vmem:[%s5333_s4 + $0x18] sm:$0xff] }
 0x63b   :  { %v2053_v21 = vadd.f32 %v3030_v16, %v2014_v19  ;;  %v3768_v22 = vpop.f32.mrb[48].mxu1  ;;  %v2368_v16 = vld [vmem:[%s5333_s4 + $0x10] sm:$0xff]  ;;  %v2370_v19 = vld [vmem:[%s5333_s4 + $0x20] sm:$0xff] }
 0x63c   :  { %v2159_v24 = vpop.f32.mrb[49].mxu1  ;;  %v2199_v54 = vadd.f32 %v3768_v22, %v3039_v47 }
 0x63d   :  { %4405 = vtanh.f32 %v2053_v21  ;;  %v3743_v26 = vpop.f32.mrb[50].mxu0  ;;  %v2198_v48 = vadd.f32 %v3038_v40, %v2159_v24  ;;  %v2371_v21 = vld [vmem:[%s5333_s4 + $0x28] sm:$0xff]  ;;  %v2373_v24 = vld [vmem:[%s5333_s4 + $0x38] sm:$0xff] }
 0x63e   :  { %4407 = vtanh.f32 %v2054_v18  ;;  %v2056_v27 = vadd.f32 %v3743_v26, %v3033_v23  ;;  %v2024_v28 = vpop.f32.mrb[51].mxu0  ;;  %v4134_v18 = vpack.c.bf16 %v2369_v17, %v2368_v16  ;;  %v5257_v22 = vpack.c.bf16 %v2371_v21, %v2370_v19  ;;  %v2372_v23 = vld [vmem:[%s5333_s4 + $0x30] sm:$0xff]  ;;  %v5275_v26 = vld [vmem:[%s5332_s3] ss:$0 sm:$0xff] }
 0x63f   :  { %v2055_v29 = vadd.f32 %v3032_v25, %v2024_v28  ;;  %v3771_v30 = vpop.f32.mrb[50].mxu1  ;;  %v5267_v25 = vpack.c.bf16 %v2373_v24, %v2372_v23 }
 0x640   :  { %v2169_v32 = vpop.f32.mrb[51].mxu1  ;;  %4135 = vmatprep.subr.bf16.mxu1 %v4134_v18 }
 0x641   :  { %4409 = vtanh.f32 %v2055_v29  ;;  %v3746_v34 = vpop.f32.mrb[52].mxu0  ;;  %v2200_v57 = vadd.f32 %v3040_v52, %v2169_v32  ;;  %4137 = vmatpush3.bf16.msra.mxu1 %v4134_v18 }
 0x642   :  { %4411 = vtanh.f32 %v2056_v27  ;;  %v2058_v35 = vadd.f32 %v3746_v34, %v3035_v31  ;;  %v2034_v36 = vpop.f32.mrb[53].mxu0  ;;  %4139 = vmatprep.subr.bf16.mxu1 %v5257_v22 }
 0x643   :  { %v2057_v37 = vadd.f32 %v3034_v33, %v2034_v36  ;;  %v3774_v38 = vpop.f32.mrb[52].mxu1 }
 0x644   :  { %v2179_v41 = vpop.f32.mrb[53].mxu1  ;;  %v2203_v13 = vadd.f32 %v3774_v38, %v3043_v60 }
 0x645   :  { %4413 = vtanh.f32 %v2057_v37  ;;  %v3749_v43 = vpop.f32.mrb[54].mxu0  ;;  %v2202_v61 = vadd.f32 %v3042_v3, %v2179_v41  ;;  %4141 = vmatpush3.bf16.msra.mxu1 %v5257_v22 }
 0x646   :  { %4415 = vtanh.f32 %v2058_v35  ;;  %v2060_v44 = vadd.f32 %v3749_v43, %v3037_v39  ;;  %v2044_v45 = vpop.f32.mrb[55].mxu0  ;;  %4143 = vmatprep.subr.bf16.mxu1 %v5267_v25 }
 0x647   :  { %v4406_v46 = vpop.eup %4405  ;;  %v2059_v49 = vadd.f32 %v3036_v42, %v2044_v45  ;;  %v3777_v50 = vpop.f32.mrb[54].mxu1 }
 0x648   :  { %v4408_v51 = vpop.eup %4407  ;;  %3794 = vmatprep.mubr.msk.f32.mxu0 %vm81_vm0, %v4406_v46  ;;  %v2189_v53 = vpop.f32.mrb[55].mxu1  ;;  %v2205_v6 = vadd.f32 %v3777_v50, %v3045_v20 }
 0x649   :  { %4417 = vtanh.f32 %v2059_v49  ;;  %3795 = vmatmul.mubr.msk.f32.vlgmr.msra.gmra.mrb[56].mxu0 %vm81_vm0, %v4408_v51  ;;  %v2204_v1 = vadd.f32 %v3044_v62, %v2189_v53  ;;  %4145 = vmatpush3.bf16.msra.mxu1 %v5267_v25 }
 0x64a   :  { %4419 = vtanh.f32 %v2060_v44  ;;  %4149 = vmatpush3.bf16.msra.mxu0 %v5065_v63  ;;  %v2201_v63 = vadd.f32 %v3771_v30, %v3041_v56  ;;  %4163 = vmatprep.subr.bf16.mxu1 %v5170_v14 }
 0x64b   :  { %v4410_v55 = vpop.eup %4409  ;;  %4421 = vtanh.f32 %v2198_v48  ;;  %4151 = vmatprep.subr.bf16.mxu0 %v5139_v2 }
 0x64c   :  { %v4412_v58 = vpop.eup %4411  ;;  %3797 = vmatprep.mubr.msk.f32.mxu0 %vm81_vm0, %v4410_v55  ;;  %4423 = vtanh.f32 %v2199_v54 }
 0x64d   :  { %3798 = vmatmul.mubr.msk.f32.gmra.mrb[58].mxu0 %vm81_vm0, %v4412_v58  ;;  %4425 = vtanh.f32 %v2200_v57 }
 0x64e   :  { %4153 = vmatpush3.bf16.msra.mxu0 %v5139_v2  ;;  %4427 = vtanh.f32 %v2201_v63 }
 0x64f   :  { %v4414_v59 = vpop.eup %4413  ;;  %4155 = vmatprep.subr.bf16.mxu0 %v5149_v7  ;;  %4429 = vtanh.f32 %v2202_v61 }
 0x650   :  { %v4416_v5 = vpop.eup %4415  ;;  %3800 = vmatprep.mubr.msk.f32.mxu0 %vm81_vm0, %v4414_v59  ;;  %4431 = vtanh.f32 %v2203_v13 }
 0x651   :  { %3801 = vmatmul.mubr.msk.f32.gmra.mrb[60].mxu0 %vm81_vm0, %v4416_v5  ;;  %4433 = vtanh.f32 %v2204_v1 }
 0x652   :  { %4157 = vmatpush3.bf16.msra.mxu0 %v5149_v7  ;;  %4435 = vtanh.f32 %v2205_v6 }
 0x653   :  { %v4418_v0 = vpop.eup %4417  ;;  %4159 = vmatprep.subr.bf16.mxu0 %v5159_v10 }
 0x654   :  { %v4420_v2 = vpop.eup %4419  ;;  %3803 = vmatprep.mubr.msk.f32.mxu0 %vm81_vm0, %v4418_v0 }
 0x655   :  { %v4422_v4 = vpop.eup %4421  ;;  %3804 = vmatmul.mubr.msk.f32.gmra.mrb[62].mxu0 %vm81_vm0, %v4420_v2 }
 0x656   :  { %4161 = vmatpush3.bf16.msra.mxu0 %v5159_v10  ;;  %3850 = vmatprep.mubr.msk.f32.mxu0 %vm81_vm0, %v4422_v4  ;;  %v4424_v7 = vpop.eup %4423 }
 0x657   :  { %v4426_v8 = vpop.eup %4425 }
 0x658   :  { %v4428_v9 = vpop.eup %4427 }
 0x659   :  { %3851 = vmatmul.mubr.msk.f32.vlgmr.msra.gmra.mrb[64].mxu0 %vm81_vm0, %v4424_v7  ;;  %v4430_v11 = vpop.eup %4429 }
 0x65a   :  { %3853 = vmatprep.mubr.msk.f32.mxu0 %vm81_vm0, %v4426_v8  ;;  %v4432_v12 = vpop.eup %4431  ;;  %v3071_v8 = vld [vmem:[%s5334_s5] ss:$0 sm:$0xff]  ;;  %s4493_s5 = smov [#allocation2]  }
 0x65b   :  { %v4434_v15 = vpop.eup %4433  ;;  %s2827_s25 = sshll.u32 %s4493_s5, 4  ;;  %s2828_s25 = int_to_ptr.vmem [resolvable:$true] %s2827_s25 }
 0x65c   :  { %v4436_v10 = vpop.eup %4435  ;;  %s4469_s26 = scalar_lea.vmem %s2828_s25, 2048  ;;  %p4474_p1 = scmp.lt.s32.totalorder %s2828_s25, %s2828_s25 }
 0x65d   :  { %3854 = vmatmul.mubr.msk.f32.gmra.mrb[66].mxu0 %vm81_vm0, %v4428_v9  ;;  %p4470_p0 = scmp.ne.s32.totalorder %s2828_s25, %s4469_s26  ;;  %p4475_p2 = scmp.lt.s32.totalorder %s4469_s26, %s4469_s26 }
 0x65e   :  { %3856 = vmatprep.mubr.msk.f32.mxu0 %vm81_vm0, %v4430_v11 }
 0x65f   :  { %p4476_p3 = por %p4475_p2, %p4474_p1 }
 0x661   :  { %3857 = vmatmul.mubr.msk.f32.gmra.mrb[68].mxu0 %vm81_vm0, %v4432_v12  ;;  %p4477_p4 = pnand %p4476_p3, %p4470_p0 }
 0x662   :  { %3859 = vmatprep.mubr.msk.f32.mxu0 %vm81_vm0, %v4434_v15 }
 0x665   :  { %3860 = vmatmul.mubr.msk.f32.gmra.mrb[70].mxu0 %vm81_vm0, %v4436_v10 }
 0x71c   :  { %v3796_v27 = vpop.f32.mrb[56].mxu0 }
 0x71d   :  { %v2325_v28 = vadd.f32 %v3796_v27, %v5275_v26  ;;  %v2319_v29 = vpop.f32.mrb[57].mxu0 }
 0x71e   :  { %v2320_v30 = vadd.f32 %v5275_v26, %v2319_v29 }
 0x720   :  { %4437 = vtanh.f32 %v2320_v30  ;;  %v3799_v31 = vpop.f32.mrb[58].mxu0 }
 0x721   :  { %4439 = vtanh.f32 %v2325_v28  ;;  %v2335_v32 = vadd.f32 %v3799_v31, %v5275_v26  ;;  %v2329_v33 = vpop.f32.mrb[59].mxu0 }
 0x722   :  { %v2330_v34 = vadd.f32 %v5275_v26, %v2329_v33 }
 0x724   :  { %4441 = vtanh.f32 %v2330_v34  ;;  %v3802_v35 = vpop.f32.mrb[60].mxu0 }
 0x725   :  { %4443 = vtanh.f32 %v2335_v32  ;;  %v2345_v36 = vadd.f32 %v3802_v35, %v5275_v26  ;;  %v2339_v37 = vpop.f32.mrb[61].mxu0 }
 0x726   :  { %v2340_v38 = vadd.f32 %v5275_v26, %v2339_v37 }
 0x728   :  { %4445 = vtanh.f32 %v2340_v38  ;;  %v3805_v39 = vpop.f32.mrb[62].mxu0 }
 0x729   :  { %4447 = vtanh.f32 %v2345_v36  ;;  %v2355_v40 = vadd.f32 %v3805_v39, %v5275_v26  ;;  %v2349_v41 = vpop.f32.mrb[63].mxu0 }
 0x72a   :  { %v4438_v42 = vpop.eup %4437  ;;  %v2350_v43 = vadd.f32 %v5275_v26, %v2349_v41 }
 0x72b   :  { %v4440_v44 = vpop.eup %4439  ;;  %3822 = vmatprep.mubr.msk.f32.mxu1 %vm81_vm0, %v4438_v42 }
 0x72c   :  { %4449 = vtanh.f32 %v2350_v43  ;;  %3823 = vmatmul.mubr.msk.f32.vlgmr.msra.gmra.mrb[56].mxu1 %vm81_vm0, %v4440_v44  ;;  %v3852_v45 = vpop.f32.mrb[64].mxu0 }
 0x72d   :  { %4451 = vtanh.f32 %v2355_v40  ;;  %v2629_v46 = vadd.f32 %v3852_v45, %v5275_v26  ;;  %4165 = vmatpush3.bf16.msra.mxu1 %v5170_v14  ;;  %v2623_v47 = vpop.f32.mrb[65].mxu0 }
 0x72e   :  { %v4442_v48 = vpop.eup %4441  ;;  %v2624_v49 = vadd.f32 %v5275_v26, %v2623_v47  ;;  %4167 = vmatprep.subr.bf16.mxu1 %v4134_v18 }
 0x72f   :  { %v4444_v50 = vpop.eup %4443  ;;  %3825 = vmatprep.mubr.msk.f32.mxu1 %vm81_vm0, %v4442_v48 }
 0x730   :  { %4453 = vtanh.f32 %v2624_v49  ;;  %3826 = vmatmul.mubr.msk.f32.gmra.mrb[58].mxu1 %vm81_vm0, %v4444_v50  ;;  %v3855_v51 = vpop.f32.mrb[66].mxu0 }
 0x731   :  { %4455 = vtanh.f32 %v2629_v46  ;;  %v2639_v52 = vadd.f32 %v3855_v51, %v5275_v26  ;;  %4169 = vmatpush3.bf16.msra.mxu1 %v4134_v18  ;;  %v2633_v53 = vpop.f32.mrb[67].mxu0 }
 0x732   :  { %v4446_v54 = vpop.eup %4445  ;;  %v2634_v14 = vadd.f32 %v5275_v26, %v2633_v53  ;;  %4171 = vmatprep.subr.bf16.mxu1 %v5257_v22 }
 0x733   :  { %v4448_v55 = vpop.eup %4447  ;;  %3828 = vmatprep.mubr.msk.f32.mxu1 %vm81_vm0, %v4446_v54 }
 0x734   :  { %4457 = vtanh.f32 %v2634_v14  ;;  %3829 = vmatmul.mubr.msk.f32.gmra.mrb[60].mxu1 %vm81_vm0, %v4448_v55  ;;  %v3858_v56 = vpop.f32.mrb[68].mxu0 }
 0x735   :  { %4459 = vtanh.f32 %v2639_v52  ;;  %v2649_v57 = vadd.f32 %v3858_v56, %v5275_v26  ;;  %4173 = vmatpush3.bf16.msra.mxu1 %v5257_v22  ;;  %v2643_v58 = vpop.f32.mrb[69].mxu0 }
 0x736   :  { %v4450_v3 = vpop.eup %4449  ;;  %v2644_v63 = vadd.f32 %v5275_v26, %v2643_v58  ;;  %4175 = vmatprep.subr.bf16.mxu1 %v5267_v25 }
 0x737   :  { %v4452_v59 = vpop.eup %4451  ;;  %3831 = vmatprep.mubr.msk.f32.mxu1 %vm81_vm0, %v4450_v3 }
 0x738   :  { %4461 = vtanh.f32 %v2644_v63  ;;  %3832 = vmatmul.mubr.msk.f32.gmra.mrb[62].mxu1 %vm81_vm0, %v4452_v59  ;;  %v3861_v60 = vpop.f32.mrb[70].mxu0 }
 0x739   :  { %4463 = vtanh.f32 %v2649_v57  ;;  %v2659_v61 = vadd.f32 %v3861_v60, %v5275_v26  ;;  %4177 = vmatpush3.bf16.msra.mxu1 %v5267_v25  ;;  %v2653_v5 = vpop.f32.mrb[71].mxu0 }
 0x73a   :  { %v4454_v62 = vpop.eup %4453  ;;  %v2654_v13 = vadd.f32 %v5275_v26, %v2653_v5 }
 0x73b   :  { %v4456_v0 = vpop.eup %4455  ;;  %3878 = vmatprep.mubr.msk.f32.mxu1 %vm81_vm0, %v4454_v62 }
 0x73c   :  { %4465 = vtanh.f32 %v2654_v13  ;;  %3879 = vmatmul.mubr.msk.f32.vlgmr.msra.gmra.mrb[64].mxu1 %vm81_vm0, %v4456_v0 }
 0x73d   :  { %4467 = vtanh.f32 %v2659_v61 }
 0x73e   :  { %v4458_v20 = vpop.eup %4457 }
 0x73f   :  { %v4460_v1 = vpop.eup %4459  ;;  %3881 = vmatprep.mubr.msk.f32.mxu1 %vm81_vm0, %v4458_v20 }
 0x740   :  { %3882 = vmatmul.mubr.msk.f32.gmra.mrb[66].mxu1 %vm81_vm0, %v4460_v1 }
 0x742   :  { %v4462_v2 = vpop.eup %4461 }
 0x743   :  { %v4464_v4 = vpop.eup %4463  ;;  %3884 = vmatprep.mubr.msk.f32.mxu1 %vm81_vm0, %v4462_v2 }
 0x744   :  { %3885 = vmatmul.mubr.msk.f32.gmra.mrb[68].mxu1 %vm81_vm0, %v4464_v4 }
 0x746   :  { %v4466_v6 = vpop.eup %4465 }
 0x747   :  { %v4468_v7 = vpop.eup %4467  ;;  %3887 = vmatprep.mubr.msk.f32.mxu1 %vm81_vm0, %v4466_v6 }
 0x748   :  { %3888 = vmatmul.mubr.msk.f32.gmra.mrb[70].mxu1 %vm81_vm0, %v4468_v7 }
 0x7ff   :  { %v3824_v9 = vpop.f32.mrb[56].mxu1 }
 0x800   :  { %v2477_v11 = vadd.f32 %v3824_v9, %v3071_v8  ;;  %v2471_v12 = vpop.f32.mrb[57].mxu1 }
 0x801   :  { %v2472_v15 = vadd.f32 %v3071_v8, %v2471_v12 }
 0x802   :  { %2511 = vst [vmem:[#allocation2 + $0x8] sm:$0xff] %v2477_v11 }
 0x803   :  { %2510 = vst [vmem:[#allocation2] sm:$0xff] %v2472_v15  ;;  %v3827_v10 = vpop.f32.mrb[58].mxu1 }
 0x804   :  { %v2487_v16 = vadd.f32 %v3827_v10, %v3071_v8  ;;  %v2481_v17 = vpop.f32.mrb[59].mxu1 }
 0x805   :  { %v2482_v18 = vadd.f32 %v3071_v8, %v2481_v17 }
 0x806   :  { %2513 = vst [vmem:[#allocation2 + $0x18] sm:$0xff] %v2487_v16 }
 0x807   :  { %2512 = vst [vmem:[#allocation2 + $0x10] sm:$0xff] %v2482_v18  ;;  %v3830_v19 = vpop.f32.mrb[60].mxu1 }
 0x808   :  { %v2497_v21 = vadd.f32 %v3830_v19, %v3071_v8  ;;  %v2491_v22 = vpop.f32.mrb[61].mxu1 }
 0x809   :  { %v2492_v23 = vadd.f32 %v3071_v8, %v2491_v22 }
 0x80a   :  { %2515 = vst [vmem:[#allocation2 + $0x28] sm:$0xff] %v2497_v21 }
 0x80b   :  { %2514 = vst [vmem:[#allocation2 + $0x20] sm:$0xff] %v2492_v23  ;;  %v3833_v24 = vpop.f32.mrb[62].mxu1 }
 0x80c   :  { %v2507_v25 = vadd.f32 %v3833_v24, %v3071_v8  ;;  %v2501_v26 = vpop.f32.mrb[63].mxu1 }
 0x80d   :  { %v2502_v27 = vadd.f32 %v3071_v8, %v2501_v26 }
 0x80e   :  { %2517 = vst [vmem:[#allocation2 + $0x38] sm:$0xff] %v2507_v25 }
 0x80f   :  { %2516 = vst [vmem:[#allocation2 + $0x30] sm:$0xff] %v2502_v27  ;;  %v3880_v28 = vpop.f32.mrb[64].mxu1 }
 0x810   :  { %v2781_v29 = vadd.f32 %v3880_v28, %v3071_v8  ;;  %v2775_v30 = vpop.f32.mrb[65].mxu1 }
 0x811   :  { %v2776_v31 = vadd.f32 %v3071_v8, %v2775_v30 }
 0x812   :  { %2815 = vst [vmem:[#allocation2 + $0x48] sm:$0xff] %v2781_v29 }
 0x813   :  { %2814 = vst [vmem:[#allocation2 + $0x40] sm:$0xff] %v2776_v31  ;;  %v3883_v32 = vpop.f32.mrb[66].mxu1 }
 0x814   :  { %v2791_v33 = vadd.f32 %v3883_v32, %v3071_v8  ;;  %v2785_v34 = vpop.f32.mrb[67].mxu1 }
 0x815   :  { %v2786_v35 = vadd.f32 %v3071_v8, %v2785_v34 }
 0x816   :  { %2817 = vst [vmem:[#allocation2 + $0x58] sm:$0xff] %v2791_v33 }
 0x817   :  { %2816 = vst [vmem:[#allocation2 + $0x50] sm:$0xff] %v2786_v35  ;;  %v3886_v36 = vpop.f32.mrb[68].mxu1 }
 0x818   :  { %v2801_v37 = vadd.f32 %v3886_v36, %v3071_v8  ;;  %v2795_v38 = vpop.f32.mrb[69].mxu1 }
 0x819   :  { %v2796_v39 = vadd.f32 %v3071_v8, %v2795_v38 }
 0x81a   :  { %2819 = vst [vmem:[#allocation2 + $0x68] sm:$0xff] %v2801_v37 }
 0x81b   :  { %2818 = vst [vmem:[#allocation2 + $0x60] sm:$0xff] %v2796_v39  ;;  %v3889_v40 = vpop.f32.mrb[70].mxu1 }
 0x81c   :  { %v2811_v41 = vadd.f32 %v3889_v40, %v3071_v8  ;;  %v2805_v42 = vpop.f32.mrb[71].mxu1 }
 0x81d   :  { %v2806_v43 = vadd.f32 %v3071_v8, %v2805_v42 }
 0x81e   :  { %2821 = vst [vmem:[#allocation2 + $0x78] sm:$0xff] %v2811_v41 }
 0x81f   :  { %2820 = vst [vmem:[#allocation2 + $0x70] sm:$0xff] %v2806_v43 }
 0x820   :  { %4480 = shalt.err (!%p4477_p4)
}
 0x821   :  { %s4481_s29 = scalar_lea.hbm %s5335_s6, 2048 }
 0x822   :  { %p4482_p5 = scmp.ne.s32.totalorder %s5335_s6, %s4481_s29  ;;  %p4485_p6 = scmp.lt.u32.totalorder %s4481_s29, %s5335_s6 }
 0x824   :  { %p4487_p7 = pnand %p4485_p6, %p4482_p5 }
 0x826   :  { %4490 = shalt.err (!%p4487_p7)
}
 0x827   :  { %s4494_s8 = smov 128   ;;  %s4495_s9 = smov 8  }
 0x828   :  { %2833 = dma.vmem_to_hbm [thread:$0]  %s2828_s25, 2048, %s5335_s6, [#allocation3], %s4494_s8, %s4494_s8, %s4495_s9  }
 0x829   :  { %4491 = dma.done.wait [#allocation3], 2048  }
 0x82a   :  { %4492 = vsyncadd [#allocation3], 4294965248 }
 0x82b   :  { %2837 = vsyncpa [#allocation3], 1 }

</bundles_post_ra>
